<compile_context>
chip_gen: v7x
topology: tpu7x:2x2x1
jax: 0.10.0
libtpu: 0.0.40
codegen_flags: <defaults>
</compile_context>

<pallas_src>
import functools

import jax
import jax.numpy as jnp
from jax import lax
from jax.experimental import pallas as pl
from jax.experimental.pallas import tpu as pltpu

BN_EPS = 1e-5


def _vmem_capacity_bytes():
    """Physical VMEM per core; conservative 64 MiB (v7x) fallback."""
    try:
        info = pltpu.get_tpu_info()
        cap = getattr(info, "vmem_capacity_bytes", None)
        if cap:
            return int(cap)
    except Exception:
        pass
    return 64 * 1024 * 1024


def _vmem_limit_bytes(cap):
    # Raise the scoped limit, but leave the compiler headroom below physical.
    return int(min(cap * 3 // 4, 100 * 1024 * 1024))


def _choose_n_tile(n, hw, c, e_pad, feat_itemsize, vmem_cap):
    """Largest batch tile whose double-buffered feature slabs fit VMEM."""
    hw_pad = ((hw + 7) // 8) * 8                    # sublane padding of HW
    per_row = 2 * hw_pad * c * feat_itemsize        # 2x-buffered feat bytes / image
    fixed = c * e_pad * 4 + 3 * 8 * e_pad * 4 + n * e_pad * 4   # weight + vecs + out
    budget = vmem_cap // 2                          # keep headroom under the limit
    tn = (budget - fixed) // per_row if budget > fixed else 1
    tn = int(max(1, min(tn, n)))
    if n % 8 == 0 and n > 8:
        tn = max(8, (tn // 8) * 8)
        while n % tn:
            tn -= 8
    else:
        tn = n                                      # small / ragged batch: one tile
    return tn


def encoder_kernel(feat_ref, w_ref, b_ref, gamma_ref, beta_ref, out_ref,
                   *, inv_hw, block_n):
    """One batch-tile step: pool + Linear; BatchNorm epilogue on the last step.

    feat_ref:  (TN, HW, C)  bf16/f32 slab of the trunk feature map (C on lanes)
    w_ref:     (C, E_pad)   Linear weight, VMEM-resident (constant block index)
    b/gamma/beta: (1, E_pad)
    out_ref:   (N, E_pad)   resident across the grid; doubles as the accumulator.
    """
    ni = pl.program_id(0)

    # AdaptiveAvgPool2d((1,1)): sum over the spatial (sublane) axis with f32
    # accumulation; the 1/HW scale is folded in after the matmul.
    pooled = jnp.sum(feat_ref[...], axis=1, dtype=jnp.float32)        # (TN, C)

    # Linear on the MXU (f32; compute is negligible, kernel is DMA-bound).
    y = jnp.dot(pooled, w_ref[...], preferred_element_type=jnp.float32)
    y = y * inv_hw + b_ref[...]                                       # (TN, E_pad)

    row0 = pl.multiple_of(ni * block_n, block_n)
    out_ref[pl.ds(row0, block_n), :] = y

    @pl.when(ni == pl.num_programs(0) - 1)
    def _bn_epilogue():
        # BatchNorm1d in training mode: batch mean / biased variance over N.
        yy = out_ref[...]                                             # (N, E_pad)
        mu = jnp.mean(yy, axis=0, keepdims=True)
        var = jnp.mean((yy - mu) * (yy - mu), axis=0, keepdims=True)
        y_hat = (yy - mu) * lax.rsqrt(var + BN_EPS)                   # rsqrt -> EUP
        out_ref[...] = y_hat * gamma_ref[...] + beta_ref[...]


@functools.partial(jax.jit, static_argnames=("block_n",))
def encoder_cnn_forward(feat_nhwc, w_t, b, gamma, beta, *, block_n=None):
    """feat_nhwc: (N, H, W, C) trunk pre-pool feature map (ideally bf16, NHWC).

    w_t: (C, E) Linear weight (transpose of PyTorch's (E, C)).
    b / gamma / beta: (1, E).  Returns (N, E) float32.
    """
    n, h, w_sp, c = feat_nhwc.shape
    e = w_t.shape[1]
    hw = h * w_sp

    # Free metadata reshape: NHWC -> (N, HW, C).  C stays on lanes.
    feat = feat_nhwc.reshape(n, hw, c)

    # Pad the embed axis to a multiple of 128 so every store is lane-dense.
    # Padded columns carry zero weight/bias/gamma/beta -> normalize to 0.
    e_pad = ((e + 127) // 128) * 128
    if e_pad != e:
        pe = e_pad - e
        w_t = jnp.pad(w_t, ((0, 0), (0, pe)))
        b = jnp.pad(b, ((0, 0), (0, pe)))
        gamma = jnp.pad(gamma, ((0, 0), (0, pe)))
        beta = jnp.pad(beta, ((0, 0), (0, pe)))

    vmem_cap = _vmem_capacity_bytes()
    if block_n is None:
        block_n = _choose_n_tile(n, hw, c, e_pad, feat.dtype.itemsize, vmem_cap)
    if n % block_n != 0:
        block_n = n                                  # fall back to a single tile
    grid = (n // block_n,)

    out = pl.pallas_call(
        functools.partial(encoder_kernel, inv_hw=1.0 / hw, block_n=block_n),
        out_shape=jax.ShapeDtypeStruct((n, e_pad), jnp.float32),
        grid_spec=pltpu.PrefetchScalarGridSpec(
            num_scalar_prefetch=0,
            grid=grid,
            in_specs=[
                # Full-C, full-HW slab of block_n images per step (contiguous DMA).
                pl.BlockSpec((block_n, hw, c), lambda ni: (ni, 0, 0)),
                # Weight / vectors: constant block index -> DMA'd once, resident.
                pl.BlockSpec((c, e_pad), lambda ni: (0, 0)),
                pl.BlockSpec((1, e_pad), lambda ni: (0, 0)),
                pl.BlockSpec((1, e_pad), lambda ni: (0, 0)),
                pl.BlockSpec((1, e_pad), lambda ni: (0, 0)),
            ],
            out_specs=pl.BlockSpec((n, e_pad), lambda ni: (0, 0)),
        ),
        compiler_params=pltpu.CompilerParams(
            # The batch axis carries the shared output block + BN epilogue
            # dependency -> it is a reduction-style ("arbitrary") axis.
            dimension_semantics=("arbitrary",),
            vmem_limit_bytes=_vmem_limit_bytes(vmem_cap),
        ),
    )(feat, w_t, b, gamma, beta)

    return out[:, :e] if e_pad != e else out


def reference_forward(feat_nhwc, w_t, b, gamma, beta):
    """Pure-JAX reference mirroring the PyTorch forward (training-mode BN)."""
    x = feat_nhwc.astype(jnp.float32)
    pooled = jnp.mean(x, axis=(1, 2))                            # avgpool + flatten
    y = pooled @ w_t + b                                         # Linear
    mu = jnp.mean(y, axis=0, keepdims=True)
    var = jnp.mean((y - mu) ** 2, axis=0, keepdims=True)
    return (y - mu) / jnp.sqrt(var + BN_EPS) * gamma + beta      # BatchNorm1d


if __name__ == "__main__":
    # Small stand-in shapes: 16 images, 7x7 spatial (ResNet-152 pre-pool
    # geometry), 512 trunk channels (stand-in for 2048; 4x128 lanes),
    # embed_size=64 (exercises the lane-dense E-padding path).
    N, H, W, C = 16, 7, 7, 512
    EMBED = 64

    key = jax.random.PRNGKey(0)
    k_feat, k_w, k_b = jax.random.split(key, 3)

    # Trunk feature map carried in bf16 (halves the dominant HBM traffic),
    # in TPU-native NHWC layout (channels on lanes).
    feat_nhwc = jax.random.normal(k_feat, (N, H, W, C), dtype=jnp.bfloat16)

    # PyTorch nn.Linear default init: U(-1/sqrt(C), 1/sqrt(C)).
    bound = 1.0 / jnp.sqrt(jnp.float32(C))
    w_t = jax.random.uniform(k_w, (C, EMBED), jnp.float32, -bound, bound)
    b = jax.random.uniform(k_b, (1, EMBED), jnp.float32, -bound, bound)
    gamma = jnp.ones((1, EMBED), jnp.float32)    # BatchNorm1d weight init
    beta = jnp.zeros((1, EMBED), jnp.float32)    # BatchNorm1d bias init

    # block_n=8 -> 2-step grid: exercises the multi-tile path (double-buffered
    # feature DMA, row-sliced stores) and the last-step BN epilogue.
    out = encoder_cnn_forward(feat_nhwc, w_t, b, gamma, beta, block_n=8)
    out = jax.block_until_ready(out)

    ref = reference_forward(feat_nhwc, w_t, b, gamma, beta)
    assert out.shape == (N, EMBED), out.shape
    assert jnp.allclose(out, ref, atol=1e-3, rtol=1e-3), "mismatch vs reference"

    print("KERNEL_OK")
</pallas_src>

<mosaic_0001>
module attributes {stable_mosaic.version = 11 : i64} {
  func.func @encoder_kernel(%arg0: i32, %arg1: memref<8x49x512xbf16, #tpu.memory_space<vmem>>, %arg2: memref<512x128xf32, #tpu.memory_space<vmem>>, %arg3: memref<1x128xf32, #tpu.memory_space<vmem>>, %arg4: memref<1x128xf32, #tpu.memory_space<vmem>>, %arg5: memref<1x128xf32, #tpu.memory_space<vmem>>, %arg6: memref<16x128xf32, #tpu.memory_space<vmem>>) attributes {dimension_semantics = [#tpu.dimension_semantics<arbitrary>], iteration_bounds = array<i64: 2>, scalar_prefetch = 0 : i64, scratch_operands = 0 : i64, tpu.core_type = #tpu.core_type<tc>, window_params = [{transform_indices = @transform_0, window_bounds = array<i64: 8, 49, 512>}, {pipeline_mode = #tpu.pipeline_mode<synchronous>, transform_indices = @transform_1, window_bounds = array<i64: 512, 128>}, {pipeline_mode = #tpu.pipeline_mode<synchronous>, transform_indices = @transform_2, window_bounds = array<i64: 1, 128>}, {pipeline_mode = #tpu.pipeline_mode<synchronous>, transform_indices = @transform_3, window_bounds = array<i64: 1, 128>}, {pipeline_mode = #tpu.pipeline_mode<synchronous>, transform_indices = @transform_4, window_bounds = array<i64: 1, 128>}, {pipeline_mode = #tpu.pipeline_mode<synchronous>, transform_indices = @transform_5, window_bounds = array<i64: 16, 128>}]} {
    %c0 = arith.constant 0 : index
    %c0_0 = arith.constant 0 : index
    %c0_1 = arith.constant 0 : index
    %0 = vector.load %arg1[%c0, %c0_0, %c0_1] : memref<8x49x512xbf16, #tpu.memory_space<vmem>>, vector<8x49x512xbf16>
    %1 = arith.extf %0 : vector<8x49x512xbf16> to vector<8x49x512xf32>
    %cst = arith.constant dense<0.000000e+00> : vector<8x512xf32>
    %2 = vector.multi_reduction <add>, %1, %cst [1] : vector<8x49x512xf32> to vector<8x512xf32>
    %c0_2 = arith.constant 0 : index
    %c0_3 = arith.constant 0 : index
    %3 = vector.load %arg2[%c0_2, %c0_3] : memref<512x128xf32, #tpu.memory_space<vmem>>, vector<512x128xf32>
    %cst_4 = arith.constant dense<0.000000e+00> : vector<8x128xf32>
    %4 = tpu.matmul %2, %3, %cst_4 {dimension_numbers = #tpu.dot_dimension_numbers<[1], [0], [0], [1], [0, 0, 1, 1], [], []>} : vector<8x512xf32>, vector<512x128xf32>, vector<8x128xf32> -> vector<8x128xf32>
    %cst_5 = arith.constant 0.0204081628 : f32
    %5 = vector.broadcast %cst_5 : f32 to vector<8x128xf32>
    %6 = arith.mulf %4, %5 : vector<8x128xf32>
    %c0_6 = arith.constant 0 : index
    %c0_7 = arith.constant 0 : index
    %7 = vector.load %arg3[%c0_6, %c0_7] : memref<1x128xf32, #tpu.memory_space<vmem>>, vector<1x128xf32>
    %8 = vector.broadcast %7 : vector<1x128xf32> to vector<8x128xf32>
    %9 = arith.addf %6, %8 : vector<8x128xf32>
    %c8_i32 = arith.constant 8 : i32
    %10 = arith.muli %arg0, %c8_i32 : i32
    %11 = tpu.assume_multiple %10, 8 : i32
    %12 = arith.index_cast %11 : i32 to index
    %c0_8 = arith.constant 0 : index
    %13 = vector.load %arg6[%12, %c0_8] : memref<16x128xf32, #tpu.memory_space<vmem>>, vector<8x128xf32>
    tpu.vector_store %arg6[%12, %c0_8], %9 {strides = array<i32>} : memref<16x128xf32, #tpu.memory_space<vmem>>, vector<8x128xf32>,
    %c1_i32 = arith.constant 1 : i32
    %14 = arith.cmpi eq, %arg0, %c1_i32 : i32
    %15 = arith.extui %14 : i1 to i32
    %c0_i32 = arith.constant 0 : i32
    %16 = arith.cmpi ne, %15, %c0_i32 : i32
    scf.if %16 {
      %c0_9 = arith.constant 0 : index
      %c0_10 = arith.constant 0 : index
      %17 = vector.load %arg6[%c0_9, %c0_10] : memref<16x128xf32, #tpu.memory_space<vmem>>, vector<16x128xf32>
      %cst_11 = arith.constant dense<0.000000e+00> : vector<128xf32>
      %18 = vector.multi_reduction <add>, %17, %cst_11 [0] : vector<16x128xf32> to vector<128xf32>
      %19 = vector.shape_cast %18 : vector<128xf32> to vector<1x128xf32>
      %cst_12 = arith.constant 1.600000e+01 : f32
      %20 = vector.broadcast %cst_12 : f32 to vector<1x128xf32>
      %21 = arith.divf %19, %20 : vector<1x128xf32>
      %22 = vector.broadcast %21 : vector<1x128xf32> to vector<16x128xf32>
      %23 = arith.subf %17, %22 : vector<16x128xf32>
      %24 = vector.broadcast %21 : vector<1x128xf32> to vector<16x128xf32>
      %25 = arith.subf %17, %24 : vector<16x128xf32>
      %26 = arith.mulf %23, %25 : vector<16x128xf32>
      %cst_13 = arith.constant dense<0.000000e+00> : vector<128xf32>
      %27 = vector.multi_reduction <add>, %26, %cst_13 [0] : vector<16x128xf32> to vector<128xf32>
      %28 = vector.shape_cast %27 : vector<128xf32> to vector<1x128xf32>
      %cst_14 = arith.constant 1.600000e+01 : f32
      %29 = vector.broadcast %cst_14 : f32 to vector<1x128xf32>
      %30 = arith.divf %28, %29 : vector<1x128xf32>
      %31 = vector.broadcast %21 : vector<1x128xf32> to vector<16x128xf32>
      %32 = arith.subf %17, %31 : vector<16x128xf32>
      %cst_15 = arith.constant 9.99999974E-6 : f32
      %33 = vector.broadcast %cst_15 : f32 to vector<1x128xf32>
      %34 = arith.addf %30, %33 : vector<1x128xf32>
      %35 = math.rsqrt %34 : vector<1x128xf32>
      %36 = vector.broadcast %35 : vector<1x128xf32> to vector<16x128xf32>
      %37 = arith.mulf %32, %36 : vector<16x128xf32>
      %c0_16 = arith.constant 0 : index
      %c0_17 = arith.constant 0 : index
      %38 = vector.load %arg4[%c0_16, %c0_17] : memref<1x128xf32, #tpu.memory_space<vmem>>, vector<1x128xf32>
      %39 = vector.broadcast %38 : vector<1x128xf32> to vector<16x128xf32>
      %40 = arith.mulf %37, %39 : vector<16x128xf32>
      %c0_18 = arith.constant 0 : index
      %c0_19 = arith.constant 0 : index
      %41 = vector.load %arg5[%c0_18, %c0_19] : memref<1x128xf32, #tpu.memory_space<vmem>>, vector<1x128xf32>
      %42 = vector.broadcast %41 : vector<1x128xf32> to vector<16x128xf32>
      %43 = arith.addf %40, %42 : vector<16x128xf32>
      %c0_20 = arith.constant 0 : index
      %c0_21 = arith.constant 0 : index
      %44 = vector.load %arg6[%c0_20, %c0_21] : memref<16x128xf32, #tpu.memory_space<vmem>>, vector<16x128xf32>
      tpu.vector_store %arg6[%c0_20, %c0_21], %43 {strides = array<i32>} : memref<16x128xf32, #tpu.memory_space<vmem>>, vector<16x128xf32>,
    } else {
    }
    return
  }
  func.func @transform_0(%arg0: i32) -> (i32, i32, i32) {
    %c0_i32 = arith.constant 0 : i32
    %c0_i32_0 = arith.constant 0 : i32
    %c0_i32_1 = arith.constant 0 : i32
    return %arg0, %c0_i32, %c0_i32_0 : i32, i32, i32
  }
  func.func @transform_1(%arg0: i32) -> (i32, i32) {
    %c0_i32 = arith.constant 0 : i32
    %c0_i32_0 = arith.constant 0 : i32
    %c0_i32_1 = arith.constant 0 : i32
    return %c0_i32, %c0_i32_0 : i32, i32
  }
  func.func @transform_2(%arg0: i32) -> (i32, i32) {
    %c0_i32 = arith.constant 0 : i32
    %c0_i32_0 = arith.constant 0 : i32
    %c0_i32_1 = arith.constant 0 : i32
    return %c0_i32, %c0_i32_0 : i32, i32
  }
  func.func @transform_3(%arg0: i32) -> (i32, i32) {
    %c0_i32 = arith.constant 0 : i32
    %c0_i32_0 = arith.constant 0 : i32
    %c0_i32_1 = arith.constant 0 : i32
    return %c0_i32, %c0_i32_0 : i32, i32
  }
  func.func @transform_4(%arg0: i32) -> (i32, i32) {
    %c0_i32 = arith.constant 0 : i32
    %c0_i32_0 = arith.constant 0 : i32
    %c0_i32_1 = arith.constant 0 : i32
    return %c0_i32, %c0_i32_0 : i32, i32
  }
  func.func @transform_5(%arg0: i32) -> (i32, i32) {
    %c0_i32 = arith.constant 0 : i32
    %c0_i32_0 = arith.constant 0 : i32
    %c0_i32_1 = arith.constant 0 : i32
    return %c0_i32, %c0_i32_0 : i32, i32
  }
}

</mosaic_0001>

<bundles_post_ra>
// kernel: encoder_cnn_forward.1
= control target key start
LH: loop header
LB: loop body
LE: loop exit
PB: predicated region body
PF: predicated region fallthrough
CT: control target
= control target key end

     0   :  { %10 = vsyncpa [#allocation3], 0  ;;  %s1597_s18 = smov 0   ;;  %s2721_s0 = inlined_call_operand.vmem [shape: bf16[16,49,512], index: 0, kind: input, shape index: {}]   ;;  %s2722_s1 = inlined_call_operand.vmem [shape: f32[512,128], index: 1, kind: input, shape index: {}]   ;;  %s2723_s2 = inlined_call_operand.vmem [shape: f32[1,128], index: 2, kind: input, shape index: {}]   ;;  %s2724_s3 = inlined_call_operand.vmem [shape: f32[1,128], index: 3, kind: input, shape index: {}]   ;;  %s2725_s4 = inlined_call_operand.vmem [shape: f32[1,128], index: 4, kind: input, shape index: {}]   ;;  %s2726_s5 = inlined_call_operand.hbm [shape: f32[16,128], index: 5, kind: output, shape index: {}]  }
   0x1 LB: > { %s1603_s19 = sadd.s32 4294967295, %s1562_s18   ;;  %p1360_p0 = scmp.ge.s32.totalorder %s1562_s18, 1  ;;  %s1562_s18 = sphi %s1597_s18, %s16_s18  }
   0x2   : > { %p185_p1 = scmp.lt.s32.totalorder %s1562_s18, 3 }
   0x4   : > { %p186_p2 = pnand %p1360_p0, %p185_p1 }
   0x6   : > { %189 = sbr.rel (%p186_p2) target bundleno = 535 (0x217), region = 40 }
   0xd   : > { %v985_v0 = vld [vmem:[%s2722_s1 + $0x80] sm:$0xff]  ;;  %v986_v1 = vld [vmem:[%s2722_s1 + $0x88] sm:$0xff]  ;;  %v987_v11 = vld [vmem:[%s2722_s1 + $0x90] sm:$0xff]  ;;  %s1644_s21 = sshll.u32 %s1603_s19, 3  ;;  %vm557_vm0 = vcmask 1040384   ;;  %vm1065_vm1 = vcmask 1041409  }
   0xe   : > { %v1017_v2 = vld [vmem:[%s2722_s1 + $0x180] sm:$0xff]  ;;  %v1442_v3 = vpack.c.bf16 %v986_v1, %v985_v0  ;;  %v1018_v4 = vld [vmem:[%s2722_s1 + $0x188] sm:$0xff]  ;;  %v988_v13 = vld [vmem:[%s2722_s1 + $0x98] sm:$0xff]  ;;  %p210_p3 = scmp.lt.s32.totalorder %s1644_s21, 15  ;;  %vm1067_vm2 = vcmask 1042434   ;;  %vm1069_vm3 = vcmask 1043459  }
   0xf   : > { %v969_v5 = vld [vmem:[%s2722_s1] sm:$0xff]  ;;  %v970_v6 = vld [vmem:[%s2722_s1 + $0x8] sm:$0xff]  ;;  %v1474_v7 = vpack.c.bf16 %v1018_v4, %v1017_v2  ;;  %v1019_v14 = vld [vmem:[%s2722_s1 + $0x190] sm:$0xff]  ;;  %v1446_v16 = vpack.c.bf16 %v988_v13, %v987_v11  ;;  %vm1071_vm4 = vcmask 1044484   ;;  %vm1073_vm5 = vcmask 1045509   ;;  %s1254_s25 = scalar_lea.vmem [#allocation2], %s1644_s21 }
  0x10   : > { %v1444_v8 = vpack.c.bf16 %v970_v6, %v969_v5  ;;  %v1001_v9 = vld [vmem:[%s2722_s1 + $0x100] sm:$0xff]  ;;  %v1002_v10 = vld [vmem:[%s2722_s1 + $0x108] sm:$0xff]  ;;  %1443 = vmatprep.subr.bf16.mxu0 %v1442_v3  ;;  %v1020_v15 = vld [vmem:[%s2722_s1 + $0x198] sm:$0xff]  ;;  %s1713_s17 = scalar_select %p210_p3, %s1644_s21, 15  ;;  %vm1075_vm6 = vcmask 1046534   ;;  %vm1077_vm7 = vcmask 1047559  }
  0x11   : > { %v1476_v12 = vpack.c.bf16 %v1002_v10, %v1001_v9  ;;  %1475 = vmatprep.subr.bf16.mxu1 %v1474_v7  ;;  %v1478_v17 = vpack.c.bf16 %v1020_v15, %v1019_v14  ;;  %v971_v18 = vld [vmem:[%s2722_s1 + $0x10] sm:$0xff]  ;;  %v972_v19 = vld [vmem:[%s2722_s1 + $0x18] sm:$0xff]  ;;  %v989_v23 = vld [vmem:[%s2722_s1 + $0xa0] sm:$0xff]  ;;  %p1365_p4 = scmp.ne.s32.totalorder %s1603_s19, 1 }
  0x12   : > { %1445 = vmatpush3.bf16.msra.mxu0 %v1444_v8  ;;  %v1003_v20 = vld [vmem:[%s2722_s1 + $0x110] sm:$0xff]  ;;  %v1448_v21 = vpack.c.bf16 %v972_v19, %v971_v18  ;;  %v1004_v22 = vld [vmem:[%s2722_s1 + $0x118] sm:$0xff]  ;;  %v990_v24 = vld [vmem:[%s2722_s1 + $0xa8] sm:$0xff]  ;;  %s1506_s24 = smul.u32 112, %s1713_s17 }
  0x13   : > { %1477 = vmatpush3.bf16.msra.mxu1 %v1476_v12  ;;  %1447 = vmatprep.subr.bf16.mxu0 %v1446_v16  ;;  %v1480_v25 = vpack.c.bf16 %v1004_v22, %v1003_v20  ;;  %v1450_v26 = vpack.c.bf16 %v990_v24, %v989_v23  ;;  %v1021_v27 = vld [vmem:[%s2722_s1 + $0x1a0] sm:$0xff]  ;;  %v1022_v28 = vld [vmem:[%s2722_s1 + $0x1a8] sm:$0xff]  ;;  %v991_v35 = vld [vmem:[%s2722_s1 + $0xb0] sm:$0xff] }
  0x14   : > { %1479 = vmatprep.subr.bf16.mxu1 %v1478_v17  ;;  %v973_v29 = vld [vmem:[%s2722_s1 + $0x20] sm:$0xff]  ;;  %v1482_v30 = vpack.c.bf16 %v1022_v28, %v1021_v27  ;;  %v974_v31 = vld [vmem:[%s2722_s1 + $0x28] sm:$0xff]  ;;  %v992_v36 = vld [vmem:[%s2722_s1 + $0xb8] sm:$0xff]  ;;  %s1809_s30 = scalar_lea.vmem %s2721_s0, %s1506_s24 }
  0x15   : > { %v1005_v32 = vld [vmem:[%s2722_s1 + $0x120] sm:$0xff]  ;;  %v1006_v33 = vld [vmem:[%s2722_s1 + $0x128] sm:$0xff]  ;;  %v1452_v34 = vpack.c.bf16 %v974_v31, %v973_v29  ;;  %v1023_v37 = vld [vmem:[%s2722_s1 + $0x1b0] sm:$0xff]  ;;  %v1454_v39 = vpack.c.bf16 %v992_v36, %v991_v35 }
  0x16   : > { %1449 = vmatpush3.bf16.msra.mxu0 %v1448_v21  ;;  %v1484_v38 = vpack.c.bf16 %v1006_v33, %v1005_v32  ;;  %v1024_v40 = vld [vmem:[%s2722_s1 + $0x1b8] sm:$0xff]  ;;  %v975_v41 = vld [vmem:[%s2722_s1 + $0x30] sm:$0xff]  ;;  %v993_v46 = vld [vmem:[%s2722_s1 + $0xc0] sm:$0xff] }
  0x17   : > { %1481 = vmatpush3.bf16.msra.mxu1 %v1480_v25  ;;  %1451 = vmatprep.subr.bf16.mxu0 %v1450_v26  ;;  %v976_v42 = vld [vmem:[%s2722_s1 + $0x38] sm:$0xff]  ;;  %v1486_v43 = vpack.c.bf16 %v1024_v40, %v1023_v37  ;;  %v1007_v44 = vld [vmem:[%s2722_s1 + $0x130] sm:$0xff]  ;;  %v994_v47 = vld [vmem:[%s2722_s1 + $0xc8] sm:$0xff] }
  0x18   : > { %1483 = vmatprep.subr.bf16.mxu1 %v1482_v30  ;;  %v1008_v45 = vld [vmem:[%s2722_s1 + $0x138] sm:$0xff]  ;;  %v1025_v48 = vld [vmem:[%s2722_s1 + $0x1c0] sm:$0xff]  ;;  %v1026_v49 = vld [vmem:[%s2722_s1 + $0x1c8] sm:$0xff]  ;;  %v1456_v50 = vpack.c.bf16 %v976_v42, %v975_v41  ;;  %v1458_v55 = vpack.c.bf16 %v994_v47, %v993_v46 }
  0x19   : > { %v977_v51 = vld [vmem:[%s2722_s1 + $0x40] sm:$0xff]  ;;  %v978_v52 = vld [vmem:[%s2722_s1 + $0x48] sm:$0xff]  ;;  %v1488_v54 = vpack.c.bf16 %v1008_v45, %v1007_v44  ;;  %v995_v57 = vld [vmem:[%s2722_s1 + $0xd0] sm:$0xff]  ;;  %v1490_v59 = vpack.c.bf16 %v1026_v49, %v1025_v48 }
  0x1a   : > { %1453 = vmatpush3.bf16.msra.mxu0 %v1452_v34  ;;  %v1009_v53 = vld [vmem:[%s2722_s1 + $0x140] sm:$0xff]  ;;  %v1010_v56 = vld [vmem:[%s2722_s1 + $0x148] sm:$0xff]  ;;  %v996_v58 = vld [vmem:[%s2722_s1 + $0xd8] sm:$0xff]  ;;  %v1460_v2 = vpack.c.bf16 %v978_v52, %v977_v51 }
  0x1b   : > { %1485 = vmatpush3.bf16.msra.mxu1 %v1484_v38  ;;  %1455 = vmatprep.subr.bf16.mxu0 %v1454_v39  ;;  %v1027_v60 = vld [vmem:[%s2722_s1 + $0x1d0] sm:$0xff]  ;;  %v1028_v61 = vld [vmem:[%s2722_s1 + $0x1d8] sm:$0xff]  ;;  %v997_v3 = vld [vmem:[%s2722_s1 + $0xe0] sm:$0xff]  ;;  %v1492_v6 = vpack.c.bf16 %v1010_v56, %v1009_v53  ;;  %v1462_v7 = vpack.c.bf16 %v996_v58, %v995_v57 }
  0x1c   : > { %1487 = vmatprep.subr.bf16.mxu1 %v1486_v43  ;;  %v979_v62 = vld [vmem:[%s2722_s1 + $0x50] sm:$0xff]  ;;  %v980_v63 = vld [vmem:[%s2722_s1 + $0x58] sm:$0xff]  ;;  %v998_v4 = vld [vmem:[%s2722_s1 + $0xe8] sm:$0xff]  ;;  %v1494_v11 = vpack.c.bf16 %v1028_v61, %v1027_v60 }
  0x1d   : > { %v1758_v0 = vld [vmem:[%s2722_s1 + $0x150] sm:$0xff]  ;;  %v1763_v1 = vld [vmem:[%s2722_s1 + $0x158] sm:$0xff]  ;;  %v1774_v5 = vld [vmem:[%s2722_s1 + $0x1e0] sm:$0xff]  ;;  %v1464_v15 = vpack.c.bf16 %v980_v63, %v979_v62  ;;  %v1466_v20 = vpack.c.bf16 %v998_v4, %v997_v3 }
  0x1e   : > { %1457 = vmatpush3.bf16.msra.mxu0 %v1456_v50  ;;  %v1779_v8 = vld [vmem:[%s2722_s1 + $0x1e8] sm:$0xff]  ;;  %v1784_v9 = vld [vmem:[%s2722_s1 + $0x60] sm:$0xff]  ;;  %v1804_v14 = vld [vmem:[%s2722_s1 + $0xf0] sm:$0xff]  ;;  %v1496_v16 = vpack.c.bf16 %v1763_v1, %v1758_v0 }
  0x1f   : > { %1489 = vmatpush3.bf16.msra.mxu1 %v1488_v54  ;;  %1459 = vmatprep.subr.bf16.mxu0 %v1458_v55  ;;  %v1789_v10 = vld [vmem:[%s2722_s1 + $0x68] sm:$0xff]  ;;  %v1794_v12 = vld [vmem:[%s2722_s1 + $0x160] sm:$0xff]  ;;  %v1816_v17 = vld [vmem:[%s2722_s1 + $0xf8] sm:$0xff]  ;;  %v1498_v21 = vpack.c.bf16 %v1779_v8, %v1774_v5 }
  0x20   : > { %1491 = vmatprep.subr.bf16.mxu1 %v1490_v59  ;;  %v1799_v13 = vld [vmem:[%s2722_s1 + $0x168] sm:$0xff]  ;;  %v1821_v18 = vld [vmem:[%s2722_s1 + $0x1f0] sm:$0xff]  ;;  %v1826_v19 = vld [vmem:[%s2722_s1 + $0x1f8] sm:$0xff]  ;;  %v1468_v22 = vpack.c.bf16 %v1789_v10, %v1784_v9  ;;  %v1470_v27 = vpack.c.bf16 %v1816_v17, %v1804_v14 }
  0x21   : > { %v1500_v23 = vpack.c.bf16 %v1799_v13, %v1794_v12  ;;  %v1837_v24 = vld [vmem:[%s2722_s1 + $0x70] sm:$0xff]  ;;  %v1842_v25 = vld [vmem:[%s2722_s1 + $0x78] sm:$0xff]  ;;  %v1502_v28 = vpack.c.bf16 %v1826_v19, %v1821_v18  ;;  %v1861_v31 = vld [vmem:[%s1809_s30] sm:$0xff] }
  0x22   : > { %1461 = vmatpush3.bf16.msra.mxu0 %v1460_v2  ;;  %v1847_v26 = vld [vmem:[%s2722_s1 + $0x170] sm:$0xff]  ;;  %v1472_v29 = vpack.c.bf16 %v1842_v25, %v1837_v24  ;;  %v1858_v30 = vld [vmem:[%s2722_s1 + $0x178] sm:$0xff]  ;;  %2870 = vst [vmem:[#allocation5_spill] sm:$0xff] %v1861_v31  ;;  %v1869_v34 = vld [vmem:[%s1809_s30 + $0x20] sm:$0xff]  ;;  %v329_v37 = vunpack.c.h.bf16 %v1861_v31 }
  0x23   : > { %1493 = vmatpush3.bf16.msra.mxu1 %v1492_v6  ;;  %1463 = vmatprep.subr.bf16.mxu0 %v1462_v7  ;;  %v1864_v32 = vld [vmem:[%s1809_s30 + $0x10] sm:$0xff]  ;;  %v1504_v33 = vpack.c.bf16 %v1858_v30, %v1847_v26  ;;  %2872 = vst [vmem:[#allocation7_spill] sm:$0xff] %v1869_v34  ;;  %v1875_v36 = vld [vmem:[%s1809_s30 + $0x40] sm:$0xff]  ;;  %v337_v43 = vunpack.c.h.bf16 %v1869_v34 }
  0x24   : > { %2871 = vst [vmem:[#allocation6_spill] sm:$0xff] %v1864_v32  ;;  %1495 = vmatprep.subr.bf16.mxu1 %v1494_v11  ;;  %v1872_v35 = vld [vmem:[%s1809_s30 + $0x30] sm:$0xff]  ;;  %2874 = vst [vmem:[#allocation9_spill] sm:$0xff] %v1875_v36  ;;  %v333_v38 = vunpack.c.h.bf16 %v1864_v32  ;;  %v1884_v41 = vld [vmem:[%s1809_s30 + $0x60] sm:$0x11]  ;;  %v345_v45 = vunpack.c.h.bf16 %v1875_v36 }
  0x25   : > { %2873 = vst [vmem:[#allocation8_spill] sm:$0xff] %v1872_v35  ;;  %v1881_v40 = vld [vmem:[%s1809_s30 + $0x50] sm:$0xff]  ;;  %2876 = vst [vmem:[#allocation11_spill] sm:$0xff] %v1884_v41  ;;  %v341_v44 = vunpack.c.h.bf16 %v1872_v35  ;;  %v1894_v47 = vld [vmem:[%s1809_s30 + $0x80] sm:$0xff]  ;;  %v353_v51 = vunpack.c.h.bf16 %v1884_v41 }
  0x26   : > { %2875 = vst [vmem:[#allocation10_spill] sm:$0xff] %v1881_v40  ;;  %v1887_v42 = vld [vmem:[%s1809_s30 + $0x70] sm:$0xff]  ;;  %1465 = vmatpush3.bf16.msra.mxu0 %v1464_v15  ;;  %2878 = vst [vmem:[#allocation13_spill] sm:$0xff] %v1894_v47  ;;  %v1900_v49 = vld [vmem:[%s1809_s30 + $0xa0] sm:$0xff]  ;;  %v349_v50 = vunpack.c.h.bf16 %v1881_v40  ;;  %v566_v53 = vadd.f32 %v333_v38, %v329_v37  ;;  %v361_v57 = vunpack.c.h.bf16 %v1894_v47 }
  0x27   : > { %2877 = vst [vmem:[#allocation12_spill] sm:$0xff] %v1887_v42  ;;  %v1897_v48 = vld [vmem:[%s1809_s30 + $0x90] sm:$0xff]  ;;  %2880 = vst [vmem:[#allocation15_spill] sm:$0xff] %v1900_v49  ;;  %v357_v52 = vunpack.c.h.bf16 %v1887_v42  ;;  %1497 = vmatpush3.bf16.msra.mxu1 %v1496_v16  ;;  %1467 = vmatprep.subr.bf16.mxu0 %v1466_v20  ;;  %v1909_v55 = vld [vmem:[%s1809_s30 + $0xc0] sm:$0xff]  ;;  %v369_v59 = vunpack.c.h.bf16 %v1900_v49  ;;  %v571_v10 = vsel %vm557_vm0, %v353_v51, 0.0 }
  0x28   : > { %2879 = vst [vmem:[#allocation14_spill] sm:$0xff] %v1897_v48  ;;  %v1906_v54 = vld [vmem:[%s1809_s30 + $0xb0] sm:$0xff]  ;;  %2882 = vst [vmem:[#allocation17_spill] sm:$0xff] %v1909_v55  ;;  %v365_v58 = vunpack.c.h.bf16 %v1897_v48  ;;  %1499 = vmatprep.subr.bf16.mxu1 %v1498_v21  ;;  %v1919_v61 = vld [vmem:[%s1809_s30 + $0xe0] sm:$0xff]  ;;  %v377_v1 = vunpack.c.h.bf16 %v1909_v55  ;;  %v567_v3 = vadd.f32 %v566_v53, %v337_v43 }
  0x29   : > { %2881 = vst [vmem:[#allocation16_spill] sm:$0xff] %v1906_v54  ;;  %v1912_v56 = vld [vmem:[%s1809_s30 + $0xd0] sm:$0x11]  ;;  %2884 = vst [vmem:[#allocation19_spill] sm:$0xff] %v1919_v61  ;;  %v1925_v63 = vld [vmem:[%s1809_s30 + $0x100] sm:$0xff]  ;;  %v373_v0 = vunpack.c.h.bf16 %v1906_v54  ;;  %v618_v53 = vadd.f32 %v361_v57, %v357_v52  ;;  %v2927_v54 = vunpack.c.h.bf16 %v1919_v61 }
  0x2a   : > { %2883 = vst [vmem:[#allocation18_spill] sm:$0xff] %v1912_v56  ;;  %v1922_v62 = vld [vmem:[%s1809_s30 + $0xf0] sm:$0xff]  ;;  %2886 = vst [vmem:[#allocation21_spill] sm:$0xff] %v1925_v63  ;;  %v1934_v5 = vld [vmem:[%s1809_s30 + $0x120] sm:$0xff]  ;;  %1469 = vmatpush3.bf16.msra.mxu0 %v1468_v22  ;;  %v568_v21 = vadd.f32 %v567_v3, %v341_v44 }
  0x2b   : > { %2885 = vst [vmem:[#allocation20_spill] sm:$0xff] %v1922_v62  ;;  %v1931_v4 = vld [vmem:[%s1809_s30 + $0x110] sm:$0xff]  ;;  %2888 = vst [vmem:[#allocation23_spill] sm:$0xff] %v1934_v5  ;;  %v1944_v11 = vld [vmem:[%s1809_s30 + $0x140] sm:$0x11]  ;;  %1501 = vmatpush3.bf16.msra.mxu1 %v1500_v23  ;;  %1471 = vmatprep.subr.bf16.mxu0 %v1470_v27  ;;  %v619_v20 = vadd.f32 %v618_v53, %v365_v58 }
  0x2c   : > { %2887 = vst [vmem:[#allocation22_spill] sm:$0xff] %v1931_v4  ;;  %v1937_v6 = vld [vmem:[%s1809_s30 + $0x130] sm:$0xff]  ;;  %2890 = vst [vmem:[#allocation25_spill] sm:$0xff] %v1944_v11  ;;  %v1950_v15 = vld [vmem:[%s1809_s30 + $0x160] sm:$0xff]  ;;  %1503 = vmatprep.subr.bf16.mxu1 %v1502_v28  ;;  %v569_v52 = vadd.f32 %v568_v21, %v345_v45 }
  0x2d   : > { %2889 = vst [vmem:[#allocation24_spill] sm:$0xff] %v1937_v6  ;;  %v1947_v14 = vld [vmem:[%s1809_s30 + $0x150] sm:$0xff]  ;;  %2892 = vst [vmem:[#allocation27_spill] sm:$0xff] %v1950_v15  ;;  %v1962_v37 = vld [vmem:[%s1809_s30 + $0x180] sm:$0xff]  ;;  %v620_v26 = vadd.f32 %v619_v20, %v369_v59 }
  0x2e   : > { %2891 = vst [vmem:[#allocation26_spill] sm:$0xff] %v1947_v14  ;;  %v1959_v22 = vld [vmem:[%s1809_s30 + $0x170] sm:$0xff]  ;;  %2894 = vst [vmem:[#allocation29_spill] sm:$0xff] %v1962_v37  ;;  %v1974_v12 = vld [vmem:[%s1809_s30 + $0x1a0] sm:$0xff]  ;;  %1473 = vmatpush3.bf16.msra.mxu0 %v1472_v29  ;;  %v570_v58 = vadd.f32 %v569_v52, %v349_v50 }
  0x2f   : > { %2893 = vst [vmem:[#allocation28_spill] sm:$0xff] %v1959_v22  ;;  %v1965_v38 = vld [vmem:[%s1809_s30 + $0x190] sm:$0xff]  ;;  %2896 = vst [vmem:[#allocation31_spill] sm:$0xff] %v1974_v12  ;;  %v1980_v23 = vld [vmem:[%s1809_s30 + $0x1c0] sm:$0xff]  ;;  %1505 = vmatpush3.bf16.msra.mxu1 %v1504_v33  ;;  %v621_v46 = vadd.f32 %v620_v26, %v373_v0 }
  0x30   : > { %2895 = vst [vmem:[#allocation30_spill] sm:$0xff] %v1965_v38  ;;  %v1977_v13 = vld [vmem:[%s1809_s30 + $0x1b0] sm:$0x11]  ;;  %2898 = vst [vmem:[#allocation33_spill] sm:$0xff] %v1980_v23  ;;  %v1989_v18 = vld [vmem:[%s1809_s30 + $0x1e0] sm:$0xff]  ;;  %v572_v17 = vadd.f32 %v571_v10, %v570_v58 }
  0x31   : > { %2897 = vst [vmem:[#allocation32_spill] sm:$0xff] %v1977_v13  ;;  %v1986_v57 = vld [vmem:[%s1809_s30 + $0x1d0] sm:$0xff]  ;;  %2900 = vst [vmem:[#allocation35_spill] sm:$0xff] %v1989_v18  ;;  %v2001_v45 = vld [vmem:[%s1809_s30 + $0x200] sm:$0xff]  ;;  %v622_v34 = vadd.f32 %v621_v46, %v377_v1 }
  0x32   : > { %2899 = vst [vmem:[#allocation34_spill] sm:$0xff] %v1986_v57  ;;  %v1992_v19 = vld [vmem:[%s1809_s30 + $0x1f0] sm:$0xff]  ;;  %2902 = vst [vmem:[#allocation37_spill] sm:$0xff] %v2001_v45  ;;  %v2007_v60 = vld [vmem:[%s1809_s30 + $0x220] sm:$0x11]  ;;  %v573_v39 = vrot.slane %v572_v17, 4 }
  0x33   : > { %2901 = vst [vmem:[#allocation36_spill] sm:$0xff] %v1992_v19  ;;  %v2004_v21 = vld [vmem:[%s1809_s30 + $0x210] sm:$0xff]  ;;  %2904 = vst [vmem:[#allocation39_spill] sm:$0xff] %v2007_v60  ;;  %v2021_v25 = vld [vmem:[%s1809_s30 + $0x240] sm:$0xff]  ;;  %v465_v16 = vunpack.c.h.bf16 %v2007_v60  ;;  %v2926_v60 = vunpack.c.h.bf16 %v1912_v56  ;;  %v2930_v56 = vunpack.c.h.bf16 %v1947_v14  ;;  %v2936_v14 = vunpack.c.h.bf16 %v1959_v22 }
  0x34   : > { %2903 = vst [vmem:[#allocation38_spill] sm:$0xff] %v2004_v21  ;;  %v2018_v24 = vld [vmem:[%s1809_s30 + $0x230] sm:$0xff]  ;;  %2906 = vst [vmem:[#allocation41_spill] sm:$0xff] %v2021_v25  ;;  %v2032_v30 = vld [vmem:[%s1809_s30 + $0x260] sm:$0xff]  ;;  %v473_v53 = vunpack.c.h.bf16 %v2021_v25 }
  0x35   : > { %2905 = vst [vmem:[#allocation40_spill] sm:$0xff] %v2018_v24  ;;  %v2024_v29 = vld [vmem:[%s1809_s30 + $0x250] sm:$0xff]  ;;  %2908 = vst [vmem:[#allocation43_spill] sm:$0xff] %v2032_v30  ;;  %v2038_v50 = vld [vmem:[%s1809_s30 + $0x280] sm:$0xff]  ;;  %v469_v52 = vunpack.c.h.bf16 %v2018_v24 }
  0x36   : > { %2907 = vst [vmem:[#allocation42_spill] sm:$0xff] %v2024_v29  ;;  %v2035_v33 = vld [vmem:[%s1809_s30 + $0x270] sm:$0xff]  ;;  %2910 = vst [vmem:[#allocation45_spill] sm:$0xff] %v2038_v50  ;;  %v477_v3 = vunpack.c.h.bf16 %v2024_v29  ;;  %v2047_v59 = vld [vmem:[%s1809_s30 + $0x2a0] sm:$0xff] }
  0x37   : > { %2909 = vst [vmem:[#allocation44_spill] sm:$0xff] %v2035_v33  ;;  %v2044_v27 = vld [vmem:[%s1809_s30 + $0x290] sm:$0x11]  ;;  %2912 = vst [vmem:[#allocation47_spill] sm:$0xff] %v2047_v59  ;;  %v2058_v10 = vld [vmem:[%s1809_s30 + $0x2c0] sm:$0xff]  ;;  %v497_v9 = vunpack.c.h.bf16 %v2047_v59  ;;  %v623_v59 = vsel %vm557_vm0, %v2926_v60, 0.0  ;;  %v2931_v60 = vunpack.c.h.bf16 %v1950_v15 }
  0x38   : > { %2911 = vst [vmem:[#allocation46_spill] sm:$0xff] %v2044_v27  ;;  %v2050_v20 = vld [vmem:[%s1809_s30 + $0x2b0] sm:$0xff]  ;;  %2914 = vst [vmem:[#allocation49_spill] sm:$0xff] %v2058_v10  ;;  %v2064_v44 = vld [vmem:[%s1809_s30 + $0x2e0] sm:$0xff]  ;;  %v493_v51 = vunpack.c.h.bf16 %v2044_v27  ;;  %v505_v8 = vunpack.c.h.bf16 %v2058_v10  ;;  %v574_v10 = vadd.f32 %v573_v39, %v572_v17  ;;  %v624_v55 = vadd.f32 %v623_v59, %v622_v34 }
  0x39   : > { %2913 = vst [vmem:[#allocation48_spill] sm:$0xff] %v2050_v20  ;;  %v2061_v58 = vld [vmem:[%s1809_s30 + $0x2d0] sm:$0xff]  ;;  %2916 = vst [vmem:[#allocation51_spill] sm:$0xff] %v2064_v44  ;;  %v501_v28 = vunpack.c.h.bf16 %v2050_v20  ;;  %v2073_v0 = vld [vmem:[%s1809_s30 + $0x300] sm:$0x11]  ;;  %v513_v2 = vunpack.c.h.bf16 %v2064_v44  ;;  %v2932_v39 = vunpack.c.h.bf16 %v1977_v13  ;;  %v2933_v34 = vunpack.c.h.bf16 %v1980_v23 }
  0x3a   : > { %2915 = vst [vmem:[#allocation50_spill] sm:$0xff] %v2061_v58  ;;  %v2070_v43 = vld [vmem:[%s1809_s30 + $0x2f0] sm:$0xff]  ;;  %2918 = vst [vmem:[#allocation53_spill] sm:$0xff] %v2073_v0  ;;  %v509_v7 = vunpack.c.h.bf16 %v2061_v58  ;;  %v2084_v32 = vld [vmem:[%s1809_s30 + $0x320] sm:$0xff]  ;;  %v521_v27 = vunpack.c.h.bf16 %v2073_v0  ;;  %v722_v0 = vadd.f32 %v2931_v60, %v2930_v56  ;;  %v2934_v59 = vunpack.c.h.bf16 %v1986_v57 }
  0x3b   : > { %2917 = vst [vmem:[#allocation52_spill] sm:$0xff] %v2070_v43  ;;  %v2076_v26 = vld [vmem:[%s1809_s30 + $0x310] sm:$0xff]  ;;  %2920 = vst [vmem:[#allocation55_spill] sm:$0xff] %v2084_v32  ;;  %v2090_v20 = vld [vmem:[%s1809_s30 + $0x340] sm:$0xff]  ;;  %v529_v46 = vunpack.c.h.bf16 %v2084_v32  ;;  %v2928_v32 = vunpack.c.h.bf16 %v1922_v62  ;;  %v826_v56 = vadd.f32 %v473_v53, %v469_v52  ;;  %v878_v23 = vadd.f32 %v501_v28, %v497_v9 }
  0x3c   : > { %2919 = vst [vmem:[#allocation54_spill] sm:$0xff] %v2076_v26  ;;  %v2087_v31 = vld [vmem:[%s1809_s30 + $0x330] sm:$0xff]  ;;  %2922 = vst [vmem:[#allocation57_spill] sm:$0xff] %v2090_v20  ;;  %v525_v29 = vunpack.c.h.bf16 %v2076_v26  ;;  %v2099_v58 = vld [vmem:[%s1809_s30 + $0x360] sm:$0xff]  ;;  %v537_v24 = vunpack.c.h.bf16 %v2090_v20  ;;  %v575_v26 = vrot.slane %v574_v10, 2  ;;  %v774_v62 = vadd.f32 %v2934_v59, %v2933_v34 }
  0x3d   : > { %2921 = vst [vmem:[#allocation56_spill] sm:$0xff] %v2087_v31  ;;  %v2096_v25 = vld [vmem:[%s1809_s30 + $0x350] sm:$0xff]  ;;  %2924 = vst [vmem:[#allocation59_spill] sm:$0xff] %v2099_v58  ;;  %v533_v1 = vunpack.c.h.bf16 %v2087_v31  ;;  %v670_v49 = vadd.f32 %v2928_v32, %v2927_v54  ;;  %v2929_v31 = vunpack.c.h.bf16 %v1944_v11  ;;  %v779_v32 = vsel %vm557_vm0, %v465_v16, 0.0  ;;  %v2344_v22 = vld [vmem:[%s1809_s30 + $0x2d8] sm:$0xff] }
  0x3e   : > { %2923 = vst [vmem:[#allocation58_spill] sm:$0xff] %v2096_v25  ;;  %v2102_v44 = vld [vmem:[%s1809_s30 + $0x370] sm:$0x11]  ;;  %v576_v48 = vadd.f32 %v575_v26, %v574_v10  ;;  %v625_v54 = vrot.slane %v624_v55, 4  ;;  %v723_v15 = vadd.f32 %v722_v0, %v2936_v14  ;;  %v2937_v26 = vunpack.c.h.bf16 %v1989_v18  ;;  %2998 = vst [vmem:[#allocation106_spill] sm:$0xff] %v2344_v22  ;;  %v2379_v41 = vld [vmem:[%s1809_s30 + $0x358] sm:$0xff] }
  0x3f   : > { %2925 = vst [vmem:[#allocation60_spill] sm:$0xff] %v2102_v44  ;;  %v549_v17 = vunpack.c.h.bf16 %v2102_v44  ;;  %v675_v20 = vsel %vm557_vm0, %v2929_v31, 0.0  ;;  %v727_v44 = vsel %vm557_vm0, %v2932_v39, 0.0  ;;  %v2935_v31 = vunpack.c.h.bf16 %v1925_v63  ;;  %v2366_v63 = vld [vmem:[%s1809_s30 + $0x328] sm:$0xff]  ;;  %3006 = vst [vmem:[#allocation114_spill] sm:$0xff] %v2379_v41 }
  0x40   : > { %v577_v10 = vrot.slane %v576_v48, 1  ;;  %v775_v60 = vadd.f32 %v774_v62, %v2937_v26  ;;  %v831_v39 = vsel %vm557_vm0, %v493_v51, 0.0  ;;  %v626_v34 = vadd.f32 %v625_v54, %v624_v55  ;;  %3003 = vst [vmem:[#allocation111_spill] sm:$0xff] %v2366_v63 }
  0x41   : > { %v671_v11 = vadd.f32 %v670_v49, %v2935_v31  ;;  %v2938_v16 = vunpack.c.h.bf16 %v1931_v4  ;;  %v2939_v57 = vunpack.c.h.bf16 %v1962_v37  ;;  %v827_v31 = vadd.f32 %v826_v56, %v477_v3 }
  0x42   : > { %v578_v13 = vadd.f32 %v577_v10, %v576_v48  ;;  %v2940_v14 = vunpack.c.h.bf16 %v1992_v19  ;;  %v879_v52 = vadd.f32 %v878_v23, %v505_v8  ;;  %v883_v62 = vsel %vm557_vm0, %v521_v27, 0.0 }
  0x43   : > { %v672_v59 = vadd.f32 %v671_v11, %v2938_v16  ;;  %v724_v49 = vadd.f32 %v723_v15, %v2939_v57  ;;  %v627_v0 = vrot.slane %v626_v34, 2  ;;  %v2941_v9 = vunpack.c.h.bf16 %v1934_v5  ;;  %v2153_v15 = vld [vmem:[%s1809_s30 + $0x8] sm:$0xff] }
  0x44   : > { %v776_v53 = vadd.f32 %v775_v60, %v2940_v14  ;;  %v2942_v55 = vunpack.c.h.bf16 %v1965_v38  ;;  %v2943_v11 = vunpack.c.h.bf16 %v2032_v30  ;;  %2944 = vst [vmem:[#allocation61_spill] sm:$0xff] %v2153_v15  ;;  %v2945_v48 = vunpack.c.h.bf16 %v2001_v45  ;;  %v2327_v45 = vld [vmem:[%s1809_s30 + $0x298] sm:$0x11] }
  0x45   : > { %v673_v51 = vadd.f32 %v672_v59, %v2941_v9  ;;  %v880_v57 = vadd.f32 %v879_v52, %v509_v7  ;;  %v930_v8 = vadd.f32 %v529_v46, %v525_v29  ;;  %v935_v23 = vsel %vm557_vm0, %v549_v17, 0.0  ;;  %v2173_v9 = vld [vmem:[%s1809_s30 + $0x28] sm:$0xff]  ;;  %2994 = vst [vmem:[#allocation102_spill] sm:$0xff] %v2327_v45 }
  0x46   : > { %v725_v28 = vadd.f32 %v724_v49, %v2942_v55  ;;  %v828_v54 = vadd.f32 %v827_v31, %v2943_v11  ;;  %v777_v3 = vadd.f32 %v776_v53, %v2945_v48  ;;  %v628_v27 = vadd.f32 %v627_v0, %v626_v34  ;;  %v2165_v49 = vld [vmem:[%s1809_s30 + $0x18] sm:$0xff]  ;;  %2952 = vst [vmem:[#allocation63_spill] sm:$0xff] %v2173_v9 }
  0x47   : > { %v2946_v56 = vunpack.c.h.bf16 %v1937_v6  ;;  %v2947_v26 = vunpack.c.h.bf16 %v1974_v12  ;;  %v2948_v16 = vunpack.c.h.bf16 %v2035_v33  ;;  %2949 = vst [vmem:[#allocation62_spill] sm:$0xff] %v2165_v49  ;;  %v2950_v31 = vunpack.c.h.bf16 %v2004_v21  ;;  %v2297_v33 = vld [vmem:[%s1809_s30 + $0x228] sm:$0x11] }
  0x48   : > { %v881_v7 = vadd.f32 %v880_v57, %v513_v2  ;;  %v931_v29 = vadd.f32 %v930_v8, %v533_v1  ;;  %v629_v17 = vrot.slane %v628_v27, 1  ;;  %v2951_v52 = vunpack.c.h.bf16 %v2038_v50  ;;  %2987 = vst [vmem:[#allocation95_spill] sm:$0xff] %v2297_v33  ;;  %v2306_v21 = vld [vmem:[%s1809_s30 + $0x248] sm:$0xff] }
  0x49   : > { %v674_v10 = vadd.f32 %v673_v51, %v2946_v56  ;;  %v726_v60 = vadd.f32 %v725_v28, %v2947_v26  ;;  %v829_v59 = vadd.f32 %v828_v54, %v2948_v16  ;;  %v778_v14 = vadd.f32 %v777_v3, %v2950_v31  ;;  %2989 = vst [vmem:[#allocation97_spill] sm:$0xff] %v2306_v21  ;;  %v2341_v12 = vld [vmem:[%s1809_s30 + $0x2c8] sm:$0xff] }
  0x4a   : > { %v2953_v55 = vunpack.c.h.bf16 %v2070_v43  ;;  %v932_v11 = vadd.f32 %v931_v29, %v537_v24  ;;  %v630_v54 = vadd.f32 %v629_v17, %v628_v27  ;;  %v2955_v8 = vunpack.c.h.bf16 %v2096_v25  ;;  %v2278_v25 = vld [vmem:[%s1809_s30 + $0x1d8] sm:$0xff]  ;;  %2997 = vst [vmem:[#allocation105_spill] sm:$0xff] %v2341_v12  ;;  %v2347_v6 = vld [vmem:[%s1809_s30 + $0x2e8] sm:$0xff] }
  0x4b   : > { %v676_v34 = vadd.f32 %v675_v20, %v674_v10  ;;  %v728_v53 = vadd.f32 %v727_v44, %v726_v60  ;;  %v830_v0 = vadd.f32 %v829_v59, %v2951_v52  ;;  %v780_v51 = vadd.f32 %v779_v32, %v778_v14  ;;  %v2179_v20 = vld [vmem:[%s1809_s30 + $0x38] sm:$0xff]  ;;  %v2184_v32 = vld [vmem:[%s1809_s30 + $0x48] sm:$0xff]  ;;  %2982 = vst [vmem:[#allocation90_spill] sm:$0xff] %v2278_v25 }
  0x4c   : > { %v882_v28 = vadd.f32 %v881_v7, %v2953_v55  ;;  %2954 = vst [vmem:[#allocation64_spill] sm:$0xff] %v2179_v20  ;;  %v933_v56 = vadd.f32 %v932_v11, %v2955_v8  ;;  %2956 = vst [vmem:[#allocation65_spill] sm:$0xff] %v2184_v32  ;;  %v2189_v60 = vld [vmem:[%s1809_s30 + $0x58] sm:$0xff]  ;;  %v2958_v59 = vunpack.c.h.bf16 %v2099_v58  ;;  %v2194_v14 = vld [vmem:[%s1809_s30 + $0x68] sm:$0x11]  ;;  %v447_v18 = vunpack.c.h.bf16 %v2278_v25 }
  0x4d   : > { %v677_v1 = vrot.slane %v676_v34, 4  ;;  %v729_v48 = vrot.slane %v728_v53, 4  ;;  %v832_v3 = vadd.f32 %v831_v39, %v830_v0  ;;  %v781_v44 = vrot.slane %v780_v51, 4  ;;  %2957 = vst [vmem:[#allocation66_spill] sm:$0xff] %v2189_v60  ;;  %2959 = vst [vmem:[#allocation67_spill] sm:$0xff] %v2194_v14  ;;  %v2202_v55 = vld [vmem:[%s1809_s30 + $0x88] sm:$0xff] }
  0x4e   : > { %v884_v57 = vadd.f32 %v883_v62, %v882_v28  ;;  %v1079_v39 = vsel %vm1065_vm1, %v630_v54, %v578_v13  ;;  %v934_v31 = vadd.f32 %v933_v56, %v2958_v59  ;;  %2961 = vst [vmem:[#allocation69_spill] sm:$0xff] %v2202_v55  ;;  %v2217_v59 = vld [vmem:[%s1809_s30 + $0xc8] sm:$0xff]  ;;  %2999 = vst [vmem:[#allocation107_spill] sm:$0xff] %v2347_v6  ;;  %v2353_v25 = vld [vmem:[%s1809_s30 + $0x2f8] sm:$0xff]  ;;  %v467_v4 = vunpack.c.h.bf16 %v2297_v33 }
  0x4f   : > { %v678_v10 = vadd.f32 %v677_v1, %v676_v34  ;;  %v730_v27 = vadd.f32 %v729_v48, %v728_v53  ;;  %v833_v26 = vrot.slane %v832_v3, 4  ;;  %v782_v16 = vadd.f32 %v781_v44, %v780_v51  ;;  %v2198_v53 = vld [vmem:[%s1809_s30 + $0x78] sm:$0xff]  ;;  %2965 = vst [vmem:[#allocation73_spill] sm:$0xff] %v2217_v59  ;;  %v2224_v28 = vld [vmem:[%s1809_s30 + $0xe8] sm:$0xff]  ;;  %3000 = vst [vmem:[#allocation108_spill] sm:$0xff] %v2353_v25 }
  0x50   : > { %v885_v62 = vrot.slane %v884_v57, 4  ;;  %2960 = vst [vmem:[#allocation68_spill] sm:$0xff] %v2198_v53  ;;  %v936_v51 = vadd.f32 %v935_v23, %v934_v31  ;;  %v2206_v48 = vld [vmem:[%s1809_s30 + $0x98] sm:$0xff]  ;;  %2967 = vst [vmem:[#allocation75_spill] sm:$0xff] %v2224_v28  ;;  %v2244_v13 = vld [vmem:[%s1809_s30 + $0x148] sm:$0x11] }
  0x51   : > { %v679_v29 = vrot.slane %v678_v10, 2  ;;  %v731_v17 = vrot.slane %v730_v27, 2  ;;  %v834_v34 = vadd.f32 %v833_v26, %v832_v3  ;;  %v783_v52 = vrot.slane %v782_v16, 2  ;;  %2962 = vst [vmem:[#allocation70_spill] sm:$0xff] %v2206_v48  ;;  %v2234_v31 = vld [vmem:[%s1809_s30 + $0x118] sm:$0xff]  ;;  %2973 = vst [vmem:[#allocation81_spill] sm:$0xff] %v2244_v13 }
  0x52   : > { %v886_v0 = vadd.f32 %v885_v62, %v884_v57  ;;  %v937_v23 = vrot.slane %v936_v51, 4  ;;  %v2210_v57 = vld [vmem:[%s1809_s30 + $0xa8] sm:$0xff]  ;;  %2970 = vst [vmem:[#allocation78_spill] sm:$0xff] %v2234_v31 }
  0x53   : > { %v680_v11 = vadd.f32 %v679_v29, %v678_v10  ;;  %v732_v54 = vadd.f32 %v731_v17, %v730_v27  ;;  %v835_v1 = vrot.slane %v834_v34, 2  ;;  %v784_v44 = vadd.f32 %v783_v52, %v782_v16  ;;  %2963 = vst [vmem:[#allocation71_spill] sm:$0xff] %v2210_v57  ;;  %v2214_v27 = vld [vmem:[%s1809_s30 + $0xb8] sm:$0xff]  ;;  %v2382_v33 = vld [vmem:[%s1809_s30 + $0x368] sm:$0xff] }
  0x54   : > { %v887_v8 = vrot.slane %v886_v0, 2  ;;  %2964 = vst [vmem:[#allocation72_spill] sm:$0xff] %v2214_v27  ;;  %v2220_v16 = vld [vmem:[%s1809_s30 + $0xd8] sm:$0x11]  ;;  %v938_v52 = vadd.f32 %v937_v23, %v936_v51  ;;  %3007 = vst [vmem:[#allocation115_spill] sm:$0xff] %v2382_v33 }
  0x55   : > { %v681_v26 = vrot.slane %v680_v11, 1  ;;  %v733_v62 = vrot.slane %v732_v54, 1  ;;  %v836_v10 = vadd.f32 %v835_v1, %v834_v34  ;;  %2966 = vst [vmem:[#allocation74_spill] sm:$0xff] %v2220_v16  ;;  %v785_v29 = vrot.slane %v784_v44, 1  ;;  %v2227_v34 = vld [vmem:[%s1809_s30 + $0xf8] sm:$0xff]  ;;  %v2230_v1 = vld [vmem:[%s1809_s30 + $0x108] sm:$0xff] }
  0x56   : > { %v888_v17 = vadd.f32 %v887_v8, %v886_v0  ;;  %2968 = vst [vmem:[#allocation76_spill] sm:$0xff] %v2227_v34  ;;  %2969 = vst [vmem:[#allocation77_spill] sm:$0xff] %v2230_v1  ;;  %v2237_v0 = vld [vmem:[%s1809_s30 + $0x128] sm:$0xff]  ;;  %v2240_v51 = vld [vmem:[%s1809_s30 + $0x138] sm:$0xff]  ;;  %v939_v2 = vrot.slane %v938_v52, 2 }
  0x57   : > { %v682_v7 = vadd.f32 %v681_v26, %v680_v11  ;;  %v734_v24 = vadd.f32 %v733_v62, %v732_v54  ;;  %v837_v56 = vrot.slane %v836_v10, 1  ;;  %2971 = vst [vmem:[#allocation79_spill] sm:$0xff] %v2237_v0  ;;  %2972 = vst [vmem:[#allocation80_spill] sm:$0xff] %v2240_v51  ;;  %v786_v23 = vadd.f32 %v785_v29, %v784_v44  ;;  %v2247_v11 = vld [vmem:[%s1809_s30 + $0x158] sm:$0xff]  ;;  %v2250_v54 = vld [vmem:[%s1809_s30 + $0x168] sm:$0xff] }
  0x58   : > { %v889_v3 = vrot.slane %v888_v17, 1  ;;  %2974 = vst [vmem:[#allocation82_spill] sm:$0xff] %v2247_v11  ;;  %2975 = vst [vmem:[#allocation83_spill] sm:$0xff] %v2250_v54  ;;  %v2255_v44 = vld [vmem:[%s1809_s30 + $0x178] sm:$0xff]  ;;  %v2258_v29 = vld [vmem:[%s1809_s30 + $0x188] sm:$0xff]  ;;  %v940_v50 = vadd.f32 %v939_v2, %v938_v52  ;;  %v419_v19 = vunpack.c.h.bf16 %v2250_v54 }
  0x59   : > { %v838_v62 = vadd.f32 %v837_v56, %v836_v10  ;;  %v1080_v46 = vsel %vm1067_vm2, %v682_v7, %v1079_v39  ;;  %2976 = vst [vmem:[#allocation84_spill] sm:$0xff] %v2255_v44  ;;  %2977 = vst [vmem:[#allocation85_spill] sm:$0xff] %v2258_v29  ;;  %v2261_v8 = vld [vmem:[%s1809_s30 + $0x198] sm:$0xff]  ;;  %v2267_v10 = vld [vmem:[%s1809_s30 + $0x1a8] sm:$0xff] }
  0x5a   : > { %2978 = vst [vmem:[#allocation86_spill] sm:$0xff] %v2261_v8  ;;  %v890_v43 = vadd.f32 %v889_v3, %v888_v17  ;;  %v1081_v56 = vsel %vm1069_vm3, %v734_v24, %v1080_v46  ;;  %2979 = vst [vmem:[#allocation87_spill] sm:$0xff] %v2267_v10  ;;  %v2270_v39 = vld [vmem:[%s1809_s30 + $0x1b8] sm:$0x11]  ;;  %v2273_v7 = vld [vmem:[%s1809_s30 + $0x1c8] sm:$0xff]  ;;  %v941_v52 = vrot.slane %v940_v50, 1 }
  0x5b   : > { %2980 = vst [vmem:[#allocation88_spill] sm:$0xff] %v2270_v39  ;;  %2981 = vst [vmem:[#allocation89_spill] sm:$0xff] %v2273_v7  ;;  %v1082_v58 = vsel %vm1071_vm4, %v786_v23, %v1081_v56  ;;  %v2281_v2 = vld [vmem:[%s1809_s30 + $0x1e8] sm:$0xff]  ;;  %v2284_v3 = vld [vmem:[%s1809_s30 + $0x1f8] sm:$0xff]  ;;  %v439_v38 = vunpack.c.h.bf16 %v2270_v39  ;;  %v443_v37 = vunpack.c.h.bf16 %v2273_v7  ;;  %v519_v7 = vunpack.c.h.bf16 %v2353_v25 }
  0x5c   : > { %2983 = vst [vmem:[#allocation91_spill] sm:$0xff] %v2281_v2  ;;  %2984 = vst [vmem:[#allocation92_spill] sm:$0xff] %v2284_v3  ;;  %v1083_v26 = vsel %vm1073_vm5, %v838_v62, %v1082_v58  ;;  %v2291_v23 = vld [vmem:[%s1809_s30 + $0x208] sm:$0xff]  ;;  %v2294_v56 = vld [vmem:[%s1809_s30 + $0x218] sm:$0xff]  ;;  %v942_v30 = vadd.f32 %v941_v52, %v940_v50  ;;  %v451_v5 = vunpack.c.h.bf16 %v2281_v2  ;;  %v455_v52 = vunpack.c.h.bf16 %v2284_v3 }
  0x5d   : > { %2985 = vst [vmem:[#allocation93_spill] sm:$0xff] %v2291_v23  ;;  %2986 = vst [vmem:[#allocation94_spill] sm:$0xff] %v2294_v56  ;;  %v1084_v17 = vsel %vm1075_vm6, %v890_v43, %v1083_v26  ;;  %v2303_v24 = vld [vmem:[%s1809_s30 + $0x238] sm:$0xff]  ;;  %v2315_v46 = vld [vmem:[%s1809_s30 + $0x268] sm:$0xff]  ;;  %v475_v3 = vunpack.c.h.bf16 %v2306_v21  ;;  %v495_v21 = vunpack.c.h.bf16 %v2327_v45  ;;  %v531_v56 = vunpack.c.h.bf16 %v2366_v63 }
  0x5e   : > { %2988 = vst [vmem:[#allocation96_spill] sm:$0xff] %v2303_v24  ;;  %v2309_v58 = vld [vmem:[%s1809_s30 + $0x258] sm:$0xff]  ;;  %2991 = vst [vmem:[#allocation99_spill] sm:$0xff] %v2315_v46  ;;  %v2321_v26 = vld [vmem:[%s1809_s30 + $0x288] sm:$0xff]  ;;  %v1085_v62 = vsel %vm1077_vm7, %v942_v30, %v1084_v17  ;;  %v471_v2 = vunpack.c.h.bf16 %v2303_v24  ;;  %v483_v47 = vunpack.c.h.bf16 %v2315_v46  ;;  %v511_v46 = vunpack.c.h.bf16 %v2344_v22 }
  0x5f   : > { %2990 = vst [vmem:[#allocation98_spill] sm:$0xff] %v2309_v58  ;;  %v2318_v43 = vld [vmem:[%s1809_s30 + $0x278] sm:$0xff]  ;;  %2993 = vst [vmem:[#allocation101_spill] sm:$0xff] %v2321_v26  ;;  %v2330_v54 = vld [vmem:[%s1809_s30 + $0x2a8] sm:$0xff]  ;;  %1168 = vmatprep.mubr.f32.mxu0 %v1085_v62  ;;  %v479_v61 = vunpack.c.h.bf16 %v2309_v58  ;;  %v507_v58 = vunpack.c.h.bf16 %v2341_v12  ;;  %v3010_v25 = vunpack.c.h.bf16 %v2165_v49  ;;  %v3012_v63 = vunpack.c.h.bf16 %v2198_v53 }
  0x60   : > { %2992 = vst [vmem:[#allocation100_spill] sm:$0xff] %v2318_v43  ;;  %2995 = vst [vmem:[#allocation103_spill] sm:$0xff] %v2330_v54  ;;  %v2333_v50 = vld [vmem:[%s1809_s30 + $0x2b8] sm:$0xff]  ;;  %v2356_v30 = vld [vmem:[%s1809_s30 + $0x308] sm:$0x11]  ;;  %v487_v42 = vunpack.c.h.bf16 %v2318_v43  ;;  %v499_v40 = vunpack.c.h.bf16 %v2330_v54  ;;  %v515_v43 = vunpack.c.h.bf16 %v2347_v6  ;;  %v3009_v6 = vunpack.c.h.bf16 %v2153_v15 }
  0x61   : > { %2996 = vst [vmem:[#allocation104_spill] sm:$0xff] %v2333_v50  ;;  %3001 = vst [vmem:[#allocation109_spill] sm:$0xff] %v2356_v30  ;;  %v2359_v17 = vld [vmem:[%s1809_s30 + $0x318] sm:$0xff]  ;;  %v2372_v62 = vld [vmem:[%s1809_s30 + $0x348] sm:$0xff]  ;;  %v503_v36 = vunpack.c.h.bf16 %v2333_v50  ;;  %v523_v35 = vunpack.c.h.bf16 %v2356_v30  ;;  %v543_v50 = vunpack.c.h.bf16 %v2379_v41  ;;  %v3011_v30 = vunpack.c.h.bf16 %v2194_v14 }
  0x62   : > { %3002 = vst [vmem:[#allocation110_spill] sm:$0xff] %v2359_v17  ;;  %v2369_v39 = vld [vmem:[%s1809_s30 + $0x338] sm:$0xff]  ;;  %3005 = vst [vmem:[#allocation113_spill] sm:$0xff] %v2372_v62  ;;  %v527_v26 = vunpack.c.h.bf16 %v2359_v17  ;;  %v539_v54 = vunpack.c.h.bf16 %v2372_v62  ;;  %v592_v10 = vadd.f32 %v3010_v25, %v3009_v6  ;;  %v3014_v41 = vunpack.c.h.bf16 %v2220_v16  ;;  %v3097_v49 = vld [vmem:[#allocation5_spill] sm:$0xff] }
  0x63   : > { %3004 = vst [vmem:[#allocation112_spill] sm:$0xff] %v2369_v39  ;;  %v2385_v24 = vld [vmem:[%s1809_s30 + $0x378] sm:$0x11]  ;;  %v535_v45 = vunpack.c.h.bf16 %v2369_v39  ;;  %v597_v17 = vsel %vm557_vm0, %v3011_v30, 0.0  ;;  %v3013_v39 = vunpack.c.h.bf16 %v2202_v55  ;;  %v3015_v22 = vunpack.c.h.bf16 %v2224_v28 }
  0x64   : > { %3008 = vst [vmem:[#allocation116_spill] sm:$0xff] %v2385_v24  ;;  %v649_v12 = vsel %vm557_vm0, %v3014_v41, 0.0  ;;  %v3016_v15 = vunpack.c.h.bf16 %v2227_v34  ;;  %v3017_v6 = vunpack.c.h.bf16 %v2173_v9  ;;  %v3018_v14 = vunpack.c.h.bf16 %v2244_v13 }
  0x65   : > { %v644_v62 = vadd.f32 %v3013_v39, %v3012_v63  ;;  %v3019_v53 = vunpack.c.h.bf16 %v2247_v11  ;;  %v753_v63 = vsel %vm557_vm0, %v439_v38, 0.0  ;;  %v3020_v39 = vunpack.c.h.bf16 %v2206_v48  ;;  %v3092_v48 = vld [vmem:[#allocation56_spill] sm:$0xff] }
  0x66   : > { %v696_v24 = vadd.f32 %v3016_v15, %v3015_v22  ;;  %v593_v25 = vadd.f32 %v592_v10, %v3017_v6  ;;  %v701_v30 = vsel %vm557_vm0, %v3018_v14, 0.0  ;;  %v3021_v28 = vunpack.c.h.bf16 %v2230_v1  ;;  %v3088_v1 = vld [vmem:[#allocation52_spill] sm:$0xff] }
  0x67   : > { %v748_v55 = vadd.f32 %v419_v19, %v3019_v53  ;;  %v645_v41 = vadd.f32 %v644_v62, %v3020_v39  ;;  %v800_v34 = vadd.f32 %v447_v18, %v443_v37  ;;  %v805_v22 = vsel %vm557_vm0, %v467_v4, 0.0 }
  0x68   : > { %v697_v16 = vadd.f32 %v696_v24, %v3021_v28  ;;  %v3022_v15 = vunpack.c.h.bf16 %v2179_v20  ;;  %v3023_v6 = vunpack.c.h.bf16 %v2255_v44  ;;  %v852_v13 = vadd.f32 %v475_v3, %v471_v2  ;;  %v3084_v44 = vld [vmem:[#allocation48_spill] sm:$0xff]  ;;  %v3095_v20 = vld [vmem:[#allocation59_spill] sm:$0xff] }
  0x69   : > { %v857_v19 = vsel %vm557_vm0, %v495_v21, 0.0  ;;  %v3024_v38 = vunpack.c.h.bf16 %v2210_v57  ;;  %v3025_v62 = vunpack.c.h.bf16 %v2234_v31  ;;  %v801_v11 = vadd.f32 %v800_v34, %v451_v5  ;;  %v3087_v31 = vld [vmem:[#allocation51_spill] sm:$0xff] }
  0x6a   : > { %v594_v10 = vadd.f32 %v593_v25, %v3022_v15  ;;  %v749_v14 = vadd.f32 %v748_v55, %v3023_v6  ;;  %v904_v28 = vadd.f32 %v503_v36, %v499_v40  ;;  %v3026_v37 = vunpack.c.h.bf16 %v2184_v32  ;;  %v3091_v57 = vld [vmem:[#allocation55_spill] sm:$0xff]  ;;  %v3094_v32 = vld [vmem:[#allocation58_spill] sm:$0xff] }
  0x6b   : > { %v646_v53 = vadd.f32 %v645_v41, %v3024_v38  ;;  %v698_v39 = vadd.f32 %v697_v16, %v3025_v62  ;;  %v3027_v18 = vunpack.c.h.bf16 %v2258_v29  ;;  %v853_v25 = vadd.f32 %v852_v13, %v479_v61  ;;  %v3083_v29 = vld [vmem:[#allocation47_spill] sm:$0xff] }
  0x6c   : > { %v595_v4 = vadd.f32 %v594_v10, %v3026_v37  ;;  %v909_v55 = vsel %vm557_vm0, %v523_v35, 0.0  ;;  %v3028_v2 = vunpack.c.h.bf16 %v2214_v27  ;;  %v3029_v3 = vunpack.c.h.bf16 %v2237_v0  ;;  %v3086_v0 = vld [vmem:[#allocation50_spill] sm:$0xff] }
  0x6d   : > { %v750_v24 = vadd.f32 %v749_v14, %v3027_v18  ;;  %v802_v15 = vadd.f32 %v801_v11, %v455_v52  ;;  %v905_v6 = vadd.f32 %v904_v28, %v507_v58  ;;  %v3030_v5 = vunpack.c.h.bf16 %v2189_v60  ;;  %v3035_v58 = vld [vmem:[#allocation87_spill] sm:$0xff]  ;;  %v3090_v27 = vld [vmem:[#allocation54_spill] sm:$0xff]  ;;  %v3093_v60 = vld [vmem:[#allocation57_spill] sm:$0xff] }
  0x6e   : > { %v647_v21 = vadd.f32 %v646_v53, %v3028_v2  ;;  %v699_v41 = vadd.f32 %v698_v39, %v3029_v3  ;;  %v3031_v40 = vunpack.c.h.bf16 %v2261_v8  ;;  %v854_v34 = vadd.f32 %v853_v25, %v483_v47  ;;  %v3037_v47 = vld [vmem:[#allocation94_spill] sm:$0xff] }
  0x6f   : > { %v596_v36 = vadd.f32 %v595_v4, %v3030_v5  ;;  %v956_v10 = vadd.f32 %v531_v56, %v527_v26  ;;  %v3032_v61 = vunpack.c.h.bf16 %v2217_v59  ;;  %v3033_v35 = vunpack.c.h.bf16 %v2240_v51  ;;  %v3082_v8 = vld [vmem:[#allocation46_spill] sm:$0xff]  ;;  %v3085_v51 = vld [vmem:[#allocation49_spill] sm:$0xff] }
  0x70   : > { %v751_v16 = vadd.f32 %v750_v24, %v3031_v40  ;;  %v3034_v38 = vunpack.c.h.bf16 %v2291_v23  ;;  %v906_v62 = vadd.f32 %v905_v6, %v511_v46  ;;  %v3036_v52 = vunpack.c.h.bf16 %v3035_v58  ;;  %v3080_v23 = vld [vmem:[#allocation44_spill] sm:$0xff]  ;;  %v3089_v59 = vld [vmem:[#allocation53_spill] sm:$0xff]  ;;  %v3099_v58 = vld [vmem:[#allocation6_spill] sm:$0xff] }
  0x71   : > { %v648_v13 = vadd.f32 %v647_v21, %v3032_v61  ;;  %v700_v14 = vadd.f32 %v699_v41, %v3033_v35  ;;  %v598_v11 = vadd.f32 %v597_v17, %v596_v36  ;;  %v855_v28 = vadd.f32 %v854_v34, %v487_v42  ;;  %v3039_v21 = vld [vmem:[#allocation101_spill] sm:$0xff] }
  0x72   : > { %v803_v53 = vadd.f32 %v802_v15, %v3034_v38  ;;  %v752_v39 = vadd.f32 %v751_v16, %v3036_v52  ;;  %v957_v37 = vadd.f32 %v956_v10, %v535_v45  ;;  %v3038_v56 = vunpack.c.h.bf16 %v3037_v47 }
  0x73   : > { %v650_v4 = vadd.f32 %v649_v12, %v648_v13  ;;  %v702_v18 = vadd.f32 %v701_v30, %v700_v14  ;;  %v907_v24 = vadd.f32 %v906_v62, %v515_v43  ;;  %v599_v25 = vrot.slane %v598_v11, 4  ;;  %v3042_v62 = vld [vmem:[#allocation116_spill] sm:$0xff] }
  0x74   : > { %v804_v26 = vadd.f32 %v803_v53, %v3038_v56  ;;  %v754_v2 = vadd.f32 %v753_v63, %v752_v39  ;;  %v3040_v3 = vunpack.c.h.bf16 %v3039_v21  ;;  %v958_v5 = vadd.f32 %v957_v37, %v539_v54 }
  0x75   : > { %v651_v15 = vrot.slane %v650_v4, 4  ;;  %v703_v46 = vrot.slane %v702_v18, 4  ;;  %v908_v6 = vadd.f32 %v907_v24, %v519_v7  ;;  %v600_v36 = vadd.f32 %v599_v25, %v598_v11 }
  0x76   : > { %v856_v41 = vadd.f32 %v855_v28, %v3040_v3  ;;  %v806_v17 = vadd.f32 %v805_v22, %v804_v26  ;;  %v755_v40 = vrot.slane %v754_v2, 4  ;;  %v959_v45 = vadd.f32 %v958_v5, %v543_v50 }
  0x77   : > { %v652_v12 = vadd.f32 %v651_v15, %v650_v4  ;;  %v704_v30 = vadd.f32 %v703_v46, %v702_v18  ;;  %v910_v34 = vadd.f32 %v909_v55, %v908_v6  ;;  %v601_v10 = vrot.slane %v600_v36, 2 }
  0x78   : > { %v858_v42 = vadd.f32 %v857_v19, %v856_v41  ;;  %v807_v16 = vrot.slane %v806_v17, 4  ;;  %v756_v43 = vadd.f32 %v755_v40, %v754_v2  ;;  %v3041_v63 = vunpack.c.h.bf16 %v2382_v33 }
  0x79   : > { %v653_v35 = vrot.slane %v652_v12, 2  ;;  %v705_v54 = vrot.slane %v704_v30, 2  ;;  %v911_v38 = vrot.slane %v910_v34, 4  ;;  %v602_v22 = vadd.f32 %v601_v10, %v600_v36  ;;  %v3045_v10 = vld [vmem:[#allocation9_spill] sm:$0xff] }
  0x7a   : > { %v859_v61 = vrot.slane %v858_v42, 4  ;;  %v960_v13 = vadd.f32 %v959_v45, %v3041_v63  ;;  %v808_v14 = vadd.f32 %v807_v16, %v806_v17  ;;  %v757_v7 = vrot.slane %v756_v43, 2  ;;  %v3044_v45 = vld [vmem:[#allocation8_spill] sm:$0xff] }
  0x7b   : > { %v3043_v19 = vunpack.c.h.bf16 %v3042_v62  ;;  %v654_v11 = vadd.f32 %v653_v35, %v652_v12  ;;  %v706_v52 = vadd.f32 %v705_v54, %v704_v30  ;;  %v912_v39 = vadd.f32 %v911_v38, %v910_v34  ;;  %v3046_v35 = vld [vmem:[#allocation10_spill] sm:$0xff]  ;;  %v3077_v54 = vld [vmem:[#allocation41_spill] sm:$0xff] }
  0x7c   : > { %v860_v53 = vadd.f32 %v859_v61, %v858_v42  ;;  %v809_v55 = vrot.slane %v808_v14, 2  ;;  %v603_v28 = vrot.slane %v602_v22, 1  ;;  %v758_v37 = vadd.f32 %v757_v7, %v756_v43 }
  0x7d   : > { %v961_v50 = vsel %vm557_vm0, %v3043_v19, 0.0  ;;  %v655_v56 = vrot.slane %v654_v11, 1  ;;  %v707_v26 = vrot.slane %v706_v52, 1  ;;  %v913_v25 = vrot.slane %v912_v39, 2 }
  0x7e   : > { %v861_v4 = vrot.slane %v860_v53, 2  ;;  %v962_v18 = vadd.f32 %v961_v50, %v960_v13  ;;  %v810_v24 = vadd.f32 %v809_v55, %v808_v14  ;;  %v604_v2 = vadd.f32 %v603_v28, %v602_v22  ;;  %v3047_v22 = vld [vmem:[#allocation11_spill] sm:$0xff] }
  0x7f   : > { %v759_v3 = vrot.slane %v758_v37, 1  ;;  %v656_v15 = vadd.f32 %v655_v56, %v654_v11  ;;  %v708_v46 = vadd.f32 %v707_v26, %v706_v52  ;;  %v914_v6 = vadd.f32 %v913_v25, %v912_v39  ;;  %v3049_v52 = vld [vmem:[#allocation13_spill] sm:$0xff]  ;;  %v3050_v39 = vld [vmem:[#allocation14_spill] sm:$0xff]  ;;  %v3052_v56 = vld [vmem:[#allocation16_spill] sm:$0xff] }
  0x80   : > { %v862_v41 = vadd.f32 %v861_v4, %v860_v53  ;;  %v963_v5 = vrot.slane %v962_v18, 4  ;;  %v811_v17 = vrot.slane %v810_v24, 1  ;;  %v352_v7 = vunpack.c.l.bf16 %v3047_v22  ;;  %v3048_v53 = vld [vmem:[#allocation12_spill] sm:$0xff]  ;;  %v3051_v4 = vld [vmem:[#allocation15_spill] sm:$0xff] }
  0x81   : > { %v760_v36 = vadd.f32 %v759_v3, %v758_v37  ;;  %v915_v16 = vrot.slane %v914_v6, 1  ;;  %v1093_v34 = vsel %vm1065_vm1, %v656_v15, %v604_v2  ;;  %v356_v19 = vunpack.c.l.bf16 %v3048_v53  ;;  %v3055_v15 = vld [vmem:[#allocation19_spill] sm:$0xff]  ;;  %v3062_v53 = vld [vmem:[#allocation26_spill] sm:$0xff] }
  0x82   : > { %v863_v40 = vrot.slane %v862_v41, 1  ;;  %v964_v42 = vadd.f32 %v963_v5, %v962_v18  ;;  %v812_v30 = vadd.f32 %v811_v17, %v810_v24  ;;  %v1094_v13 = vsel %vm1067_vm2, %v708_v46, %v1093_v34  ;;  %v3056_v17 = vld [vmem:[#allocation20_spill] sm:$0xff]  ;;  %v3075_v25 = vld [vmem:[#allocation39_spill] sm:$0xff] }
  0x83   : > { %v916_v14 = vadd.f32 %v915_v16, %v914_v6  ;;  %v1095_v38 = vsel %vm1069_vm3, %v760_v36, %v1094_v13  ;;  %v360_v55 = vunpack.c.l.bf16 %v3049_v52  ;;  %v364_v28 = vunpack.c.l.bf16 %v3050_v39  ;;  %v3057_v36 = vld [vmem:[#allocation21_spill] sm:$0xff]  ;;  %v3059_v16 = vld [vmem:[#allocation23_spill] sm:$0xff]  ;;  %v3064_v39 = vld [vmem:[#allocation28_spill] sm:$0xff] }
  0x84   : > { %v864_v61 = vadd.f32 %v863_v40, %v862_v41  ;;  %v965_v63 = vrot.slane %v964_v42, 2  ;;  %v1096_v11 = vsel %vm1071_vm4, %v812_v30, %v1095_v38  ;;  %v3054_v41 = vld [vmem:[#allocation18_spill] sm:$0xff]  ;;  %v384_v46 = vunpack.c.l.bf16 %v3055_v15  ;;  %v3061_v38 = vld [vmem:[#allocation25_spill] sm:$0xff]  ;;  %v3068_v34 = vld [vmem:[#allocation32_spill] sm:$0xff] }
  0x85   : > { %v380_v5 = vunpack.c.l.bf16 %v3054_v41  ;;  %v388_v6 = vunpack.c.l.bf16 %v3056_v17  ;;  %v392_v40 = vunpack.c.l.bf16 %v3057_v36  ;;  %v408_v22 = vunpack.c.l.bf16 %v3061_v38  ;;  %v3065_v41 = vld [vmem:[#allocation29_spill] sm:$0xff]  ;;  %v3066_v17 = vld [vmem:[#allocation30_spill] sm:$0xff] }
  0x86   : > { %v966_v50 = vadd.f32 %v965_v63, %v964_v42  ;;  %v1097_v37 = vsel %vm1073_vm5, %v864_v61, %v1096_v11  ;;  %v3058_v42 = vld [vmem:[#allocation22_spill] sm:$0xff]  ;;  %v412_v11 = vunpack.c.l.bf16 %v3062_v53  ;;  %v424_v15 = vunpack.c.l.bf16 %v3065_v41  ;;  %v3071_v53 = vld [vmem:[#allocation35_spill] sm:$0xff] }
  0x87   : > { %v1098_v3 = vsel %vm1075_vm6, %v916_v14, %v1097_v37  ;;  %v396_v30 = vunpack.c.l.bf16 %v3058_v42  ;;  %v3063_v14 = vld [vmem:[#allocation27_spill] sm:$0xff]  ;;  %v420_v37 = vunpack.c.l.bf16 %v3064_v39  ;;  %v3070_v38 = vld [vmem:[#allocation34_spill] sm:$0xff]  ;;  %v448_v43 = vunpack.c.l.bf16 %v3071_v53  ;;  %v3073_v39 = vld [vmem:[#allocation37_spill] sm:$0xff] }
  0x88   : > { %v967_v2 = vrot.slane %v966_v50, 1  ;;  %v416_v52 = vunpack.c.l.bf16 %v3063_v14  ;;  %v444_v26 = vunpack.c.l.bf16 %v3070_v38  ;;  %v3072_v14 = vld [vmem:[#allocation36_spill] sm:$0xff]  ;;  %v456_v12 = vunpack.c.l.bf16 %v3073_v39 }
  0x89   : > { %v452_v18 = vunpack.c.l.bf16 %v3072_v14  ;;  %v464_v33 = vunpack.c.l.bf16 %v3075_v25  ;;  %v472_v21 = vunpack.c.l.bf16 %v3077_v54  ;;  %v484_v38 = vunpack.c.l.bf16 %v3080_v23 }
  0x8a   : > { %v968_v61 = vadd.f32 %v967_v2, %v966_v50  ;;  %v436_v50 = vunpack.c.l.bf16 %v3068_v34  ;;  %v3069_v2 = vld [vmem:[#allocation33_spill] sm:$0xff]  ;;  %v3078_v34 = vld [vmem:[#allocation42_spill] sm:$0xff]  ;;  %v492_v14 = vunpack.c.l.bf16 %v3082_v8  ;;  %v496_v39 = vunpack.c.l.bf16 %v3083_v29 }
  0x8b   : > { %v440_v13 = vunpack.c.l.bf16 %v3069_v2  ;;  %v476_v47 = vunpack.c.l.bf16 %v3078_v34  ;;  %v3079_v2 = vld [vmem:[#allocation43_spill] sm:$0xff]  ;;  %v500_v62 = vunpack.c.l.bf16 %v3084_v44  ;;  %v504_v25 = vunpack.c.l.bf16 %v3085_v51 }
  0x8c   : > { %v1099_v36 = vsel %vm1077_vm7, %v968_v61, %v1098_v3  ;;  %v3076_v3 = vld [vmem:[#allocation40_spill] sm:$0xff]  ;;  %v512_v54 = vunpack.c.l.bf16 %v3087_v31  ;;  %v516_v34 = vunpack.c.l.bf16 %v3088_v1  ;;  %v524_v23 = vunpack.c.l.bf16 %v3090_v27 }
  0x8d   : > { %1238 = vmatprep.mubr.f32.mxu1 %v1099_v36  ;;  %v468_v61 = vunpack.c.l.bf16 %v3076_v3  ;;  %v480_v36 = vunpack.c.l.bf16 %v3079_v2  ;;  %v508_v3 = vunpack.c.l.bf16 %v3086_v0  ;;  %v520_v2 = vunpack.c.l.bf16 %v3089_v59 }
  0x8e   : > { %v528_v53 = vunpack.c.l.bf16 %v3091_v57  ;;  %v532_v8 = vunpack.c.l.bf16 %v3092_v48  ;;  %v536_v29 = vunpack.c.l.bf16 %v3093_v60  ;;  %v540_v44 = vunpack.c.l.bf16 %v3094_v32  ;;  %v3101_v48 = vld [vmem:[#allocation7_spill] sm:$0xff] }
  0x8f   : > { %v3098_v31 = vunpack.c.l.bf16 %v3097_v49  ;;  %v3100_v1 = vunpack.c.l.bf16 %v3099_v58  ;;  %v558_v59 = vsel %vm557_vm0, %v352_v7, 0.0  ;;  %v605_v27 = vadd.f32 %v360_v55, %v356_v19 }
  0x90   : > { %v610_v57 = vsel %vm557_vm0, %v380_v5, 0.0  ;;  %v657_v42 = vadd.f32 %v388_v6, %v384_v46  ;;  %v3102_v63 = vunpack.c.l.bf16 %v3101_v48  ;;  %v662_v32 = vsel %vm557_vm0, %v408_v22, 0.0 }
  0x91   : > { %v552_v41 = vadd.f32 %v3100_v1, %v3098_v31  ;;  %v709_v24 = vadd.f32 %v416_v52, %v412_v11  ;;  %v714_v51 = vsel %vm557_vm0, %v436_v50, 0.0  ;;  %v606_v0 = vadd.f32 %v605_v27, %v364_v28 }
  0x92   : > { %v658_v9 = vadd.f32 %v657_v42, %v392_v40  ;;  %v761_v49 = vadd.f32 %v444_v26, %v440_v13  ;;  %v766_v58 = vsel %vm557_vm0, %v464_v33, 0.0  ;;  %v3103_v31 = vunpack.c.l.bf16 %v3044_v45 }
  0x93   : > { %v553_v60 = vadd.f32 %v552_v41, %v3102_v63  ;;  %v710_v19 = vadd.f32 %v709_v24, %v420_v37  ;;  %v813_v55 = vadd.f32 %v472_v21, %v468_v61  ;;  %v818_v5 = vsel %vm557_vm0, %v492_v14, 0.0  ;;  %v3112_v41 = vld [vmem:[#allocation24_spill] sm:$0xff] }
  0x94   : > { %v3104_v46 = vunpack.c.l.bf16 %v3051_v4  ;;  %v659_v63 = vadd.f32 %v658_v9, %v396_v30  ;;  %v762_v22 = vadd.f32 %v761_v49, %v448_v43  ;;  %v865_v11 = vadd.f32 %v500_v62, %v496_v39  ;;  %v3118_v49 = vld [vmem:[#allocation45_spill] sm:$0xff] }
  0x95   : > { %v554_v7 = vadd.f32 %v553_v60, %v3103_v31  ;;  %v3105_v52 = vunpack.c.l.bf16 %v3045_v10  ;;  %v711_v40 = vadd.f32 %v710_v19, %v424_v15  ;;  %v814_v26 = vadd.f32 %v813_v55, %v476_v47  ;;  %v3110_v15 = vld [vmem:[#allocation17_spill] sm:$0xff] }
  0x96   : > { %v607_v6 = vadd.f32 %v606_v0, %v3104_v46  ;;  %v870_v33 = vsel %vm557_vm0, %v520_v2, 0.0  ;;  %v3106_v45 = vunpack.c.l.bf16 %v3052_v56  ;;  %v3107_v21 = vunpack.c.l.bf16 %v3059_v16  ;;  %v3114_v2 = vld [vmem:[#allocation31_spill] sm:$0xff] }
  0x97   : > { %v555_v28 = vadd.f32 %v554_v7, %v3105_v52  ;;  %v763_v37 = vadd.f32 %v762_v22, %v452_v18  ;;  %v866_v42 = vadd.f32 %v865_v11, %v504_v25  ;;  %v3108_v4 = vunpack.c.l.bf16 %v3046_v35 }
  0x98   : > { %v608_v13 = vadd.f32 %v607_v6, %v3106_v45  ;;  %v660_v24 = vadd.f32 %v659_v63, %v3107_v21  ;;  %v3109_v62 = vunpack.c.l.bf16 %v3066_v17  ;;  %v815_v10 = vadd.f32 %v814_v26, %v480_v36  ;;  %v3116_v17 = vld [vmem:[#allocation38_spill] sm:$0xff]  ;;  %v3121_v21 = vld [vmem:[#allocation60_spill] sm:$0xff] }
  0x99   : > { %v556_v9 = vadd.f32 %v555_v28, %v3108_v4  ;;  %v917_v30 = vadd.f32 %v528_v53, %v524_v23  ;;  %v3111_v47 = vunpack.c.l.bf16 %v3110_v15  ;;  %v3113_v61 = vunpack.c.l.bf16 %v3112_v41 }
  0x9a   : > { %v712_v43 = vadd.f32 %v711_v40, %v3109_v62  ;;  %v764_v14 = vadd.f32 %v763_v37, %v456_v12  ;;  %v867_v39 = vadd.f32 %v866_v42, %v508_v3  ;;  %v3115_v18 = vunpack.c.l.bf16 %v3114_v2 }
  0x9b   : > { %v609_v50 = vadd.f32 %v608_v13, %v3111_v47  ;;  %v661_v56 = vadd.f32 %v660_v24, %v3113_v61  ;;  %v559_v16 = vadd.f32 %v558_v59, %v556_v9  ;;  %v816_v0 = vadd.f32 %v815_v10, %v484_v38 }
  0x9c   : > { %v713_v25 = vadd.f32 %v712_v43, %v3115_v18  ;;  %v918_v35 = vadd.f32 %v917_v30, %v532_v8  ;;  %v3117_v48 = vunpack.c.l.bf16 %v3116_v17  ;;  %v868_v53 = vadd.f32 %v867_v39, %v512_v54 }
  0x9d   : > { %v611_v1 = vadd.f32 %v610_v57, %v609_v50  ;;  %v663_v27 = vadd.f32 %v662_v32, %v661_v56  ;;  %v560_v23 = vrot.slane %v559_v16, 4  ;;  %v3119_v31 = vunpack.c.l.bf16 %v3118_v49  ;;  %v3125_v49 = vld [vmem:[#allocation63_spill] sm:$0xff] }
  0x9e   : > { %v765_v36 = vadd.f32 %v764_v14, %v3117_v48  ;;  %v715_v60 = vadd.f32 %v714_v51, %v713_v25  ;;  %v919_v19 = vadd.f32 %v918_v35, %v536_v29  ;;  %v869_v55 = vadd.f32 %v868_v53, %v516_v34  ;;  %v3124_v48 = vld [vmem:[#allocation62_spill] sm:$0xff] }
  0x9f   : > { %v817_v7 = vadd.f32 %v816_v0, %v3119_v31  ;;  %v612_v12 = vrot.slane %v611_v1, 4  ;;  %v664_v3 = vrot.slane %v663_v27, 4  ;;  %v561_v46 = vadd.f32 %v560_v23, %v559_v16  ;;  %v3123_v0 = vld [vmem:[#allocation61_spill] sm:$0xff]  ;;  %v3174_v31 = vld [vmem:[#allocation112_spill] sm:$0xff]  ;;  %v3176_v35 = vld [vmem:[#allocation114_spill] sm:$0xff] }
  0xa0   : > { %v767_v59 = vadd.f32 %v766_v58, %v765_v36  ;;  %v716_v6 = vrot.slane %v715_v60, 4  ;;  %v920_v8 = vadd.f32 %v919_v19, %v540_v44  ;;  %v871_v22 = vadd.f32 %v870_v33, %v869_v55  ;;  %v3171_v55 = vld [vmem:[#allocation109_spill] sm:$0xff] }
  0xa1   : > { %v819_v38 = vadd.f32 %v818_v5, %v817_v7  ;;  %v613_v57 = vadd.f32 %v612_v12, %v611_v1  ;;  %v665_v32 = vadd.f32 %v664_v3, %v663_v27  ;;  %v562_v11 = vrot.slane %v561_v46, 2  ;;  %v3126_v12 = vld [vmem:[#allocation64_spill] sm:$0xff]  ;;  %v3173_v3 = vld [vmem:[#allocation111_spill] sm:$0xff]  ;;  %v3175_v36 = vld [vmem:[#allocation113_spill] sm:$0xff] }
  0xa2   : > { %v768_v63 = vrot.slane %v767_v59, 4  ;;  %v717_v54 = vadd.f32 %v716_v6, %v715_v60  ;;  %v3120_v51 = vunpack.c.l.bf16 %v3095_v20  ;;  %v872_v45 = vrot.slane %v871_v22, 4 }
  0xa3   : > { %v820_v52 = vrot.slane %v819_v38, 4  ;;  %v614_v40 = vrot.slane %v613_v57, 2  ;;  %v666_v29 = vrot.slane %v665_v32, 2  ;;  %v563_v58 = vadd.f32 %v562_v11, %v561_v46 }
  0xa4   : > { %v921_v28 = vadd.f32 %v920_v8, %v3120_v51  ;;  %v769_v26 = vadd.f32 %v768_v63, %v767_v59  ;;  %v718_v34 = vrot.slane %v717_v54, 2  ;;  %v3122_v5 = vunpack.c.l.bf16 %v3121_v21  ;;  %v3127_v59 = vld [vmem:[#allocation65_spill] sm:$0xff]  ;;  %v3132_v51 = vld [vmem:[#allocation70_spill] sm:$0xff]  ;;  %v3166_v21 = vld [vmem:[#allocation104_spill] sm:$0xff] }
  0xa5   : > { %v821_v13 = vadd.f32 %v820_v52, %v819_v38  ;;  %v615_v24 = vadd.f32 %v614_v40, %v613_v57  ;;  %v667_v37 = vadd.f32 %v666_v29, %v665_v32  ;;  %v873_v42 = vadd.f32 %v872_v45, %v871_v22  ;;  %v3128_v38 = vld [vmem:[#allocation66_spill] sm:$0xff]  ;;  %v3129_v57 = vld [vmem:[#allocation67_spill] sm:$0xff]  ;;  %v3130_v22 = vld [vmem:[#allocation68_spill] sm:$0xff] }
  0xa6   : > { %v922_v44 = vsel %vm557_vm0, %v3122_v5, 0.0  ;;  %v770_v33 = vrot.slane %v769_v26, 2  ;;  %v564_v4 = vrot.slane %v563_v58, 1  ;;  %v719_v9 = vadd.f32 %v718_v34, %v717_v54  ;;  %v3131_v54 = vld [vmem:[#allocation69_spill] sm:$0xff]  ;;  %v3136_v5 = vld [vmem:[#allocation74_spill] sm:$0xff]  ;;  %v3170_v34 = vld [vmem:[#allocation108_spill] sm:$0xff] }
  0xa7   : > { %v822_v62 = vrot.slane %v821_v13, 2  ;;  %v923_v20 = vadd.f32 %v922_v44, %v921_v28  ;;  %v616_v43 = vrot.slane %v615_v24, 1  ;;  %v668_v10 = vrot.slane %v667_v37, 1  ;;  %v3168_v8 = vld [vmem:[#allocation106_spill] sm:$0xff] }
  0xa8   : > { %v771_v30 = vadd.f32 %v770_v33, %v769_v26  ;;  %v874_v15 = vrot.slane %v873_v42, 2  ;;  %v565_v47 = vadd.f32 %v564_v4, %v563_v58  ;;  %v720_v50 = vrot.slane %v719_v9, 1  ;;  %v3133_v26 = vld [vmem:[#allocation71_spill] sm:$0xff]  ;;  %v3134_v58 = vld [vmem:[#allocation72_spill] sm:$0xff]  ;;  %v3172_v45 = vld [vmem:[#allocation110_spill] sm:$0xff] }
  0xa9   : > { %v823_v41 = vadd.f32 %v822_v62, %v821_v13  ;;  %v924_v61 = vrot.slane %v923_v20, 4  ;;  %v617_v56 = vadd.f32 %v616_v43, %v615_v24  ;;  %v669_v14 = vadd.f32 %v668_v10, %v667_v37  ;;  %v3137_v24 = vld [vmem:[#allocation75_spill] sm:$0xff]  ;;  %v3138_v33 = vld [vmem:[#allocation76_spill] sm:$0xff] }
  0xaa   : > { %v772_v39 = vrot.slane %v771_v30, 1  ;;  %v875_v16 = vadd.f32 %v874_v15, %v873_v42  ;;  %v721_v2 = vadd.f32 %v720_v50, %v719_v9  ;;  %v354_v32 = vunpack.c.l.bf16 %v3129_v57  ;;  %v3139_v9 = vld [vmem:[#allocation77_spill] sm:$0xff]  ;;  %v3141_v10 = vld [vmem:[#allocation79_spill] sm:$0xff] }
  0xab   : > { %v824_v18 = vrot.slane %v823_v41, 1  ;;  %v925_v25 = vadd.f32 %v924_v61, %v923_v20  ;;  %v1066_v17 = vsel %vm1065_vm1, %v617_v56, %v565_v47  ;;  %v358_v11 = vunpack.c.l.bf16 %v3130_v22  ;;  %v3140_v20 = vld [vmem:[#allocation78_spill] sm:$0xff]  ;;  %v3143_v50 = vld [vmem:[#allocation81_spill] sm:$0xff]  ;;  %v3165_v47 = vld [vmem:[#allocation103_spill] sm:$0xff] }
  0xac   : > { %v773_v1 = vadd.f32 %v772_v39, %v771_v30  ;;  %v876_v27 = vrot.slane %v875_v16, 1  ;;  %v1068_v60 = vsel %vm1067_vm2, %v669_v14, %v1066_v17  ;;  %v362_v52 = vunpack.c.l.bf16 %v3131_v54  ;;  %v3144_v61 = vld [vmem:[#allocation82_spill] sm:$0xff]  ;;  %v3145_v14 = vld [vmem:[#allocation83_spill] sm:$0xff]  ;;  %v3154_v54 = vld [vmem:[#allocation92_spill] sm:$0xff] }
  0xad   : > { %v825_v53 = vadd.f32 %v824_v18, %v823_v41  ;;  %v926_v23 = vrot.slane %v925_v25, 2  ;;  %v1070_v19 = vsel %vm1069_vm3, %v721_v2, %v1068_v60  ;;  %v366_v28 = vunpack.c.l.bf16 %v3132_v51  ;;  %v3146_v2 = vld [vmem:[#allocation84_spill] sm:$0xff]  ;;  %v3167_v17 = vld [vmem:[#allocation105_spill] sm:$0xff]  ;;  %v3169_v30 = vld [vmem:[#allocation107_spill] sm:$0xff] }
  0xae   : > { %v877_v7 = vadd.f32 %v876_v27, %v875_v16  ;;  %v1072_v6 = vsel %vm1071_vm4, %v773_v1, %v1070_v19  ;;  %v382_v44 = vunpack.c.l.bf16 %v3136_v5  ;;  %v386_v37 = vunpack.c.l.bf16 %v3137_v24  ;;  %v3150_v60 = vld [vmem:[#allocation88_spill] sm:$0xff]  ;;  %v3151_v19 = vld [vmem:[#allocation89_spill] sm:$0xff]  ;;  %v3177_v5 = vld [vmem:[#allocation115_spill] sm:$0xff] }
  0xaf   : > { %v927_v46 = vadd.f32 %v926_v23, %v925_v25  ;;  %v1074_v63 = vsel %vm1073_vm5, %v825_v53, %v1072_v6  ;;  %v390_v42 = vunpack.c.l.bf16 %v3138_v33  ;;  %v394_v62 = vunpack.c.l.bf16 %v3139_v9  ;;  %v3147_v25 = vld [vmem:[#allocation85_spill] sm:$0xff]  ;;  %v3152_v6 = vld [vmem:[#allocation90_spill] sm:$0xff]  ;;  %v3157_v33 = vld [vmem:[#allocation95_spill] sm:$0xff] }
  0xb0   : > { %v1076_v29 = vsel %vm1075_vm6, %v877_v7, %v1074_v63  ;;  %v398_v43 = vunpack.c.l.bf16 %v3140_v20  ;;  %v410_v41 = vunpack.c.l.bf16 %v3143_v50  ;;  %v414_v56 = vunpack.c.l.bf16 %v3144_v61  ;;  %v3153_v63 = vld [vmem:[#allocation91_spill] sm:$0xff]  ;;  %v3158_v9 = vld [vmem:[#allocation96_spill] sm:$0xff]  ;;  %v3159_v50 = vld [vmem:[#allocation97_spill] sm:$0xff] }
  0xb1   : > { %v928_v40 = vrot.slane %v927_v46, 1  ;;  %v418_v39 = vunpack.c.l.bf16 %v3145_v14  ;;  %v422_v18 = vunpack.c.l.bf16 %v3146_v2  ;;  %v426_v1 = vunpack.c.l.bf16 %v3147_v25  ;;  %v3160_v14 = vld [vmem:[#allocation98_spill] sm:$0xff]  ;;  %v3161_v2 = vld [vmem:[#allocation99_spill] sm:$0xff] }
  0xb2   : > { %v438_v7 = vunpack.c.l.bf16 %v3150_v60  ;;  %v446_v57 = vunpack.c.l.bf16 %v3152_v6  ;;  %v450_v22 = vunpack.c.l.bf16 %v3153_v63  ;;  %v454_v51 = vunpack.c.l.bf16 %v3154_v54  ;;  %v3162_v60 = vld [vmem:[#allocation100_spill] sm:$0xff]  ;;  %v3163_v6 = vld [vmem:[#allocation101_spill] sm:$0xff]  ;;  %v3164_v23 = vld [vmem:[#allocation102_spill] sm:$0xff] }
  0xb3   : > { %v929_v4 = vadd.f32 %v928_v40, %v927_v46  ;;  %v442_v46 = vunpack.c.l.bf16 %v3151_v19  ;;  %v3155_v40 = vld [vmem:[#allocation93_spill] sm:$0xff]  ;;  %v470_v20 = vunpack.c.l.bf16 %v3158_v9  ;;  %v474_v61 = vunpack.c.l.bf16 %v3159_v50 }
  0xb4   : > { %v482_v25 = vunpack.c.l.bf16 %v3161_v2  ;;  %v486_v19 = vunpack.c.l.bf16 %v3162_v60  ;;  %v490_v63 = vunpack.c.l.bf16 %v3163_v6  ;;  %v494_v54 = vunpack.c.l.bf16 %v3164_v23 }
  0xb5   : > { %v1078_v16 = vsel %vm1077_vm7, %v929_v4, %v1076_v29  ;;  %v458_v29 = vunpack.c.l.bf16 %v3155_v40  ;;  %v466_v4 = vunpack.c.l.bf16 %v3157_v33  ;;  %v498_v40 = vunpack.c.l.bf16 %v3165_v47 }
  0xb6   : > { %1169 = vmatmul.mubr.f32.vlgmr.msra.gmra.mrb[0].mxu0 %v1078_v16  ;;  %v478_v16 = vunpack.c.l.bf16 %v3160_v14  ;;  %v502_v24 = vunpack.c.l.bf16 %v3166_v21  ;;  %v506_v33 = vunpack.c.l.bf16 %v3167_v17  ;;  %v510_v9 = vunpack.c.l.bf16 %v3168_v8 }
  0xb7   : > { %v514_v50 = vunpack.c.l.bf16 %v3169_v30  ;;  %v518_v14 = vunpack.c.l.bf16 %v3170_v34  ;;  %v522_v2 = vunpack.c.l.bf16 %v3171_v55  ;;  %v526_v60 = vunpack.c.l.bf16 %v3172_v45 }
  0xb8   : > { %v530_v6 = vunpack.c.l.bf16 %v3173_v3  ;;  %v534_v23 = vunpack.c.l.bf16 %v3174_v31  ;;  %v538_v47 = vunpack.c.l.bf16 %v3175_v36  ;;  %v542_v21 = vunpack.c.l.bf16 %v3176_v35 }
  0xb9   : > { %v3179_v30 = vunpack.c.l.bf16 %v3123_v0  ;;  %v3180_v34 = vunpack.c.l.bf16 %v3124_v48  ;;  %v584_v55 = vsel %vm557_vm0, %v354_v32, 0.0  ;;  %v631_v45 = vadd.f32 %v362_v52, %v358_v11 }
  0xba   : > { %v636_v3 = vsel %vm557_vm0, %v382_v44, 0.0  ;;  %v683_v13 = vadd.f32 %v390_v42, %v386_v37  ;;  %v688_v31 = vsel %vm557_vm0, %v410_v41, 0.0  ;;  %v3181_v36 = vunpack.c.l.bf16 %v3125_v49 }
  0xbb   : > { %v579_v15 = vadd.f32 %v3180_v34, %v3179_v30  ;;  %v735_v27 = vadd.f32 %v418_v39, %v414_v56  ;;  %v740_v17 = vsel %vm557_vm0, %v438_v7, 0.0  ;;  %v787_v8 = vadd.f32 %v446_v57, %v442_v46  ;;  %v3196_v34 = vld [vmem:[#allocation94_spill] sm:$0xff] }
  0xbc   : > { %v632_v53 = vadd.f32 %v631_v45, %v366_v28  ;;  %v684_v0 = vadd.f32 %v683_v13, %v394_v62  ;;  %v792_v48 = vsel %vm557_vm0, %v466_v4, 0.0  ;;  %v839_v30 = vadd.f32 %v474_v61, %v470_v20 }
  0xbd   : > { %v580_v35 = vadd.f32 %v579_v15, %v3181_v36  ;;  %v3182_v32 = vunpack.c.l.bf16 %v3126_v12  ;;  %v736_v52 = vadd.f32 %v735_v27, %v422_v18  ;;  %v788_v44 = vadd.f32 %v787_v8, %v450_v22  ;;  %v3194_v8 = vld [vmem:[#allocation87_spill] sm:$0xff] }
  0xbe   : > { %v844_v37 = vsel %vm557_vm0, %v494_v54, 0.0  ;;  %v3183_v42 = vunpack.c.l.bf16 %v3133_v26  ;;  %v685_v15 = vadd.f32 %v684_v0, %v398_v43  ;;  %v840_v41 = vadd.f32 %v839_v30, %v478_v16  ;;  %v3192_v16 = vld [vmem:[#allocation80_spill] sm:$0xff] }
  0xbf   : > { %v581_v11 = vadd.f32 %v580_v35, %v3182_v32  ;;  %v891_v56 = vadd.f32 %v502_v24, %v498_v40  ;;  %v3184_v39 = vunpack.c.l.bf16 %v3127_v59  ;;  %v737_v13 = vadd.f32 %v736_v52, %v426_v1  ;;  %v3190_v1 = vld [vmem:[#allocation73_spill] sm:$0xff] }
  0xc0   : > { %v633_v49 = vadd.f32 %v632_v53, %v3183_v42  ;;  %v789_v62 = vadd.f32 %v788_v44, %v454_v51  ;;  %v896_v7 = vsel %vm557_vm0, %v522_v2, 0.0  ;;  %v3185_v12 = vunpack.c.l.bf16 %v3134_v58  ;;  %v3188_v53 = vld [vmem:[#allocation86_spill] sm:$0xff] }
  0xc1   : > { %v582_v28 = vadd.f32 %v581_v11, %v3184_v39  ;;  %v3186_v18 = vunpack.c.l.bf16 %v3141_v10  ;;  %v841_v57 = vadd.f32 %v840_v41, %v482_v25  ;;  %v892_v22 = vadd.f32 %v891_v56, %v506_v33 }
  0xc2   : > { %v634_v46 = vadd.f32 %v633_v49, %v3185_v12  ;;  %v3187_v26 = vunpack.c.l.bf16 %v3128_v38  ;;  %v3189_v24 = vunpack.c.l.bf16 %v3188_v53  ;;  %v790_v59 = vadd.f32 %v789_v62, %v458_v29  ;;  %v3199_v12 = vld [vmem:[#allocation116_spill] sm:$0xff] }
  0xc3   : > { %v686_v27 = vadd.f32 %v685_v15, %v3186_v18  ;;  %v943_v20 = vadd.f32 %v530_v6, %v526_v60  ;;  %v3191_v51 = vunpack.c.l.bf16 %v3190_v1  ;;  %v3193_v54 = vunpack.c.l.bf16 %v3192_v16 }
  0xc4   : > { %v583_v43 = vadd.f32 %v582_v28, %v3187_v26  ;;  %v738_v4 = vadd.f32 %v737_v13, %v3189_v24  ;;  %v842_v40 = vadd.f32 %v841_v57, %v486_v19  ;;  %v893_v2 = vadd.f32 %v892_v22, %v510_v9 }
  0xc5   : > { %v635_v61 = vadd.f32 %v634_v46, %v3191_v51  ;;  %v687_v58 = vadd.f32 %v686_v27, %v3193_v54  ;;  %v3195_v25 = vunpack.c.l.bf16 %v3194_v8  ;;  %v3197_v38 = vunpack.c.l.bf16 %v3196_v34 }
  0xc6   : > { %v585_v10 = vadd.f32 %v584_v55, %v583_v43  ;;  %v944_v36 = vadd.f32 %v943_v20, %v534_v23  ;;  %v843_v29 = vadd.f32 %v842_v40, %v490_v63  ;;  %v894_v60 = vadd.f32 %v893_v2, %v514_v50 }
  0xc7   : > { %v739_v33 = vadd.f32 %v738_v4, %v3195_v25  ;;  %v791_v45 = vadd.f32 %v790_v59, %v3197_v38  ;;  %v637_v35 = vadd.f32 %v636_v3, %v635_v61  ;;  %v689_v0 = vadd.f32 %v688_v31, %v687_v58 }
  0xc8   : > { %v586_v6 = vrot.slane %v585_v10, 4  ;;  %v945_v11 = vadd.f32 %v944_v36, %v538_v47  ;;  %v845_v19 = vadd.f32 %v844_v37, %v843_v29  ;;  %v895_v9 = vadd.f32 %v894_v60, %v518_v14 }
  0xc9   : > { %v741_v30 = vadd.f32 %v740_v17, %v739_v33  ;;  %v793_v32 = vadd.f32 %v792_v48, %v791_v45  ;;  %v638_v52 = vrot.slane %v637_v35, 4  ;;  %v690_v44 = vrot.slane %v689_v0, 4 }
  0xca   : > { %v587_v55 = vadd.f32 %v586_v6, %v585_v10  ;;  %v946_v15 = vadd.f32 %v945_v11, %v542_v21  ;;  %v846_v39 = vrot.slane %v845_v19, 4  ;;  %v897_v23 = vadd.f32 %v896_v7, %v895_v9 }
  0xcb   : > { %v742_v42 = vrot.slane %v741_v30, 4  ;;  %v794_v49 = vrot.slane %v793_v32, 4  ;;  %v639_v41 = vadd.f32 %v638_v52, %v637_v35  ;;  %v691_v56 = vadd.f32 %v690_v44, %v689_v0 }
  0xcc   : > { %v588_v3 = vrot.slane %v587_v55, 2  ;;  %v3198_v50 = vunpack.c.l.bf16 %v3177_v5  ;;  %v847_v28 = vadd.f32 %v846_v39, %v845_v19  ;;  %v898_v13 = vrot.slane %v897_v23, 4 }
  0xcd   : > { %v743_v31 = vadd.f32 %v742_v42, %v741_v30  ;;  %v795_v63 = vadd.f32 %v794_v49, %v793_v32  ;;  %v640_v48 = vrot.slane %v639_v41, 2  ;;  %v692_v47 = vrot.slane %v691_v56, 2 }
  0xce   : > { %v947_v17 = vadd.f32 %v946_v15, %v3198_v50  ;;  %v589_v37 = vadd.f32 %v588_v3, %v587_v55  ;;  %v3200_v46 = vunpack.c.l.bf16 %v3199_v12  ;;  %v848_v7 = vrot.slane %v847_v28, 2  ;;  %v1363_v15 = vld [vmem:[%s2723_s2] ss:$0 sm:$0xff] }
  0xcf   : > { %v744_v14 = vrot.slane %v743_v31, 2  ;;  %v796_v62 = vrot.slane %v795_v63, 2  ;;  %v641_v18 = vadd.f32 %v640_v48, %v639_v41  ;;  %v693_v27 = vadd.f32 %v692_v47, %v691_v56 }
  0xd0   : > { %v948_v21 = vsel %vm557_vm0, %v3200_v46, 0.0  ;;  %v899_v57 = vadd.f32 %v898_v13, %v897_v23  ;;  %v590_v22 = vrot.slane %v589_v37, 1  ;;  %v849_v4 = vadd.f32 %v848_v7, %v847_v28 }
  0xd1   : > { %v745_v26 = vadd.f32 %v744_v14, %v743_v31  ;;  %v797_v43 = vadd.f32 %v796_v62, %v795_v63  ;;  %v949_v5 = vadd.f32 %v948_v21, %v947_v17  ;;  %v642_v53 = vrot.slane %v641_v18, 1 }
  0xd2   : > { %v694_v24 = vrot.slane %v693_v27, 1  ;;  %v900_v59 = vrot.slane %v899_v57, 2  ;;  %v591_v20 = vadd.f32 %v590_v22, %v589_v37  ;;  %v850_v58 = vrot.slane %v849_v4, 1 }
  0xd3   : > { %v746_v1 = vrot.slane %v745_v26, 1  ;;  %v798_v51 = vrot.slane %v797_v43, 1  ;;  %v950_v61 = vrot.slane %v949_v5, 4  ;;  %v643_v16 = vadd.f32 %v642_v53, %v641_v18 }
  0xd4   : > { %v695_v54 = vadd.f32 %v694_v24, %v693_v27  ;;  %v901_v40 = vadd.f32 %v900_v59, %v899_v57  ;;  %v851_v25 = vadd.f32 %v850_v58, %v849_v4  ;;  %v1367_v4 = vld [vmem:[%s2725_s4] ss:$0 sm:$0xff] (!%p1365_p4) }
  0xd5   : > { %v747_v2 = vadd.f32 %v746_v1, %v745_v26  ;;  %v799_v10 = vadd.f32 %v798_v51, %v797_v43  ;;  %v951_v8 = vadd.f32 %v950_v61, %v949_v5  ;;  %v1086_v34 = vsel %vm1065_vm1, %v643_v16, %v591_v20  ;;  %v1366_v5 = vld [vmem:[%s2724_s3] ss:$0 sm:$0xff] (!%p1365_p4) }
  0xd6   : > { %v902_v33 = vrot.slane %v901_v40, 1  ;;  %v1087_v45 = vsel %vm1067_vm2, %v695_v54, %v1086_v34 }
  0xd7   : > { %v952_v38 = vrot.slane %v951_v8, 2  ;;  %v1088_v35 = vsel %vm1069_vm3, %v747_v2, %v1087_v45 }
  0xd8   : > { %v903_v36 = vadd.f32 %v902_v33, %v901_v40  ;;  %v1089_v29 = vsel %vm1071_vm4, %v799_v10, %v1088_v35 }
  0xd9   : > { %v953_v0 = vadd.f32 %v952_v38, %v951_v8  ;;  %v1090_v60 = vsel %vm1073_vm5, %v851_v25, %v1089_v29 }
  0xda   : > { %v1091_v30 = vsel %vm1075_vm6, %v903_v36, %v1090_v60 }
  0xdb   : > { %v954_v6 = vrot.slane %v953_v0, 1 }
  0xdd   : > { %v955_v32 = vadd.f32 %v954_v6, %v953_v0 }
  0xdf   : > { %v1092_v11 = vsel %vm1077_vm7, %v955_v32, %v1091_v30 }
  0xe0   : > { %1239 = vmatmul.mubr.f32.vlgmr.msra.gmra.mrb[0].mxu1 %v1092_v11 }
 0x189   : > { %v1404_v52 = vpop.f32.mrb[0].mxu0 }
 0x18a   : > { %v1405_v44 = vpop.f32.mrb[1].mxu0 }
 0x18b   : > { %v1406_v19 = vadd.f32 %v1405_v44, %v1404_v52 }
 0x1b3   : > { %v1439_v9 = vpop.f32.mrb[0].mxu1 }
 0x1b4   : > { %v1440_v55 = vpop.f32.mrb[1].mxu1 }
 0x1b5   : > { %v1441_v42 = vadd.f32 %v1440_v55, %v1439_v9 }
 0x1b7   : > { %v1241_v49 = vadd.f32 %v1441_v42, %v1406_v19  ;;  %1259 = sbr.rel (%p1365_p4) target bundleno = 509 (0x1fd), region = 44 }
 0x1b9   : > { %v1244_v41 = vmul.f32 0.020408163, %v1241_v49 }
 0x1bb   : > { %v1252_v56 = vadd.f32 %v1363_v15, %v1244_v41 }
 0x1bd   : > { %1255 = vst [vmem:[%s1254_s25] sm:$0xff] %v1252_v56 }
 0x1c4   : > { %v1260_v39 = vld [vmem:[#allocation2] sm:$0xff]  ;;  %v1261_v23 = vld [vmem:[#allocation2 + $0x8] sm:$0xff] }
 0x1c5   : > { %v1262_v3 = vadd.f32 %v1261_v23, %v1260_v39 }
 0x1c7   : > { %v1263_v31 = vrot.slane %v1262_v3, 4 }
 0x1c9   : > { %v1264_v63 = vadd.f32 %v1263_v31, %v1262_v3 }
 0x1cb   : > { %v1265_v50 = vrot.slane %v1264_v63, 2 }
 0x1cd   : > { %v1266_v17 = vadd.f32 %v1265_v50, %v1264_v63 }
 0x1cf   : > { %v1267_v48 = vrot.slane %v1266_v17, 1 }
 0x1d1   : > { %v1268_v47 = vadd.f32 %v1267_v48, %v1266_v17 }
 0x1d3   : > { %v1270_v28 = vmul.f32 0.0625, %v1268_v47 }
 0x1d5   : > { %v1271_v13 = vsub.f32 %v1260_v39, %v1270_v28  ;;  %v1272_v37 = vsub.f32 %v1261_v23, %v1270_v28 }
 0x1d7   : > { %v1273_v14 = vmul.f32 %v1271_v13, %v1271_v13  ;;  %v1274_v62 = vmul.f32 %v1272_v37, %v1272_v37 }
 0x1d9   : > { %v1275_v12 = vadd.f32 %v1274_v62, %v1273_v14 }
 0x1db   : > { %v1276_v46 = vrot.slane %v1275_v12, 4 }
 0x1dd   : > { %v1277_v21 = vadd.f32 %v1276_v46, %v1275_v12 }
 0x1df   : > { %v1278_v18 = vrot.slane %v1277_v21, 2 }
 0x1e1   : > { %v1279_v27 = vadd.f32 %v1278_v18, %v1277_v21 }
 0x1e3   : > { %v1280_v7 = vrot.slane %v1279_v27, 1 }
 0x1e5   : > { %v1281_v57 = vadd.f32 %v1280_v7, %v1279_v27 }
 0x1e7   : > { %v1282_v22 = vmul.f32 0.0625, %v1281_v57 }
 0x1e9   : > { %v1283_v26 = vadd.f32 1e-05, %v1282_v22 }
 0x1eb   : > { %1524 = vrsqrt.f32 %v1283_v26 }
 0x1f5   : > { %v1525_v43 = vpop.eup %1524 }
 0x1f6   : > { %v1285_v53 = vmul.f32 %v1525_v43, %v1271_v13  ;;  %v1286_v24 = vmul.f32 %v1525_v43, %v1272_v37 }
 0x1f8   : > { %v1294_v59 = vmul.f32 %v1366_v5, %v1285_v53  ;;  %v1295_v20 = vmul.f32 %v1366_v5, %v1286_v24 }
 0x1fa   : > { %v1303_v1 = vadd.f32 %v1367_v4, %v1294_v59  ;;  %v1304_v51 = vadd.f32 %v1367_v4, %v1295_v20 }
 0x1fc   : > { %1305 = vst [vmem:[#allocation2] sm:$0xff] %v1303_v1  ;;  %1306 = vst [vmem:[#allocation2 + $0x8] sm:$0xff] %v1304_v51 }
 0x1fd PF: > { %p1511_p5 = scmp.eq.s32.totalorder %s1603_s19, 1  ;;  %s1564_s29 = smov [#allocation2]  }
 0x1fe   : > { %s1313_s30 = sshll.u32 %s1564_s29, 4  ;;  %s1314_s30 = int_to_ptr.vmem [resolvable:$true] %s1313_s30 }
 0x1ff   : > { %s1526_s6 = scalar_lea.vmem %s1314_s30, 256  ;;  %p1533_p9 = scmp.lt.s32.totalorder %s1314_s30, %s1314_s30 }
 0x200   : > { %p1527_p6 = scmp.ne.s32.totalorder %s1314_s30, %s1526_s6  ;;  %p1534_p10 = scmp.lt.s32.totalorder %s1526_s6, %s1526_s6 }
 0x202   : > { %p1528_p7 = pnand %p1527_p6, %p1511_p5  ;;  %p1535_p11 = por %p1534_p10, %p1533_p9 }
 0x204   : > { %p1529_p8 = pneg %p1528_p7 }
 0x206   : > { %p1536_p12 = pnand %p1535_p11, %p1529_p8 }
 0x208   : > { %1539 = shalt.err (!%p1536_p12)
}
 0x209   : > { %s1540_s8 = scalar_lea.hbm %s2726_s5, 256 }
 0x20a   : > { %p1541_p13 = scmp.ne.s32.totalorder %s2726_s5, %s1540_s8  ;;  %p1546_p2 = scmp.lt.u32.totalorder %s1540_s8, %s2726_s5 }
 0x20c   : > { %p1542_p0 = pnand %p1541_p13, %p1511_p5 }
 0x20e   : > { %p1543_p1 = pneg %p1542_p0 }
 0x210   : > { %p1548_p3 = pnand %p1546_p2, %p1543_p1 }
 0x212   : > { %1551 = shalt.err (!%p1548_p3)
}
 0x213   : > { %s1565_s12 = smov 128   ;;  %s1566_s13 = smov 8  }
 0x214   : > { %1508 = dma.vmem_to_hbm [thread:$0]  (%p1511_p5), %s1314_s30, 256, %s2726_s5, [#allocation3], %s1565_s12, %s1565_s12, %s1566_s13  }
 0x215   : > { %1557 = dma.done.wait (%p1511_p5), [#allocation3], 256  }
 0x216   : > { %1559 = vsyncadd (%p1511_p5), [#allocation3], 4294967040 }
 0x217 PF: > { %s16_s18 = sadd.s32 1, %s1562_s18  }
 0x218   : > { %p13_p4 = scmp.ge.s32.totalorder %s16_s18, 4  }
 0x21a   :  { %15 = sbr.rel (!%p13_p4) target bundleno = 1 (0x1), region = 72 }
 0x221   :  { %1329 = vsyncpa [#allocation3], 1 }
 0x222   :  { %1331 = vsyncpa [#allocation3 + $0x1], 1 }

</bundles_post_ra>
